<compile_context>
chip_gen: v7x
topology: tpu7x:2x2x1
jax: 0.10.0
libtpu: 0.0.40
codegen_flags: <defaults>
</compile_context>

<pallas_src>
import functools

import numpy as np
import jax
import jax.numpy as jnp
from jax import lax
from jax.experimental import pallas as pl
from jax.experimental.pallas import tpu as pltpu


def _bilinear_matrix(out_size, in_size):
    """Row-interp matrix for nn.Upsample(scale_factor=2, mode='bilinear', align_corners=True)."""
    A = np.zeros((out_size, in_size), np.float32)
    if out_size == 1 or in_size == 1:
        A[:, 0] = 1.0
        return A
    scale = (in_size - 1) / (out_size - 1)
    for i in range(out_size):
        s = i * scale
        i0 = min(int(np.floor(s)), in_size - 1)
        i1 = min(i0 + 1, in_size - 1)
        w = s - i0
        A[i, i0] += 1.0 - w
        A[i, i1] += w
    return A


def _two_tensorcores():
    """True on chips with 2 TensorCores per chip (v7x)."""
    try:
        kind = jax.devices()[0].device_kind.lower()
    except Exception:
        return False
    return ("v7" in kind) or ("7x" in kind) or ("tpu7" in kind)


def _up_kernel(x1_ref, x2_ref, kup_ref, w1_ref, s1_ref, t1_ref,
               w2_ref, s2_ref, t2_ref, mask_ref,
               o_ref, xin_ref, y1_ref, *, nb, c1, c2, wp):
    cin = c1 + c2
    cmid = w1_ref.shape[1]
    cout = w2_ref.shape[1]
    s = x2_ref.shape[1]               # Hp*Wp per image (flat padded spatial)
    l = xin_ref.shape[1]
    lout = nb * s
    pad = wp + 1                      # OOB guard: every tap slice stays in-bounds
    f32 = jnp.float32
    cdt = xin_ref.dtype

    # ---- zero the small guard gutters of both slabs (per-step, megacore-safe) ----
    xin_ref[:, 0:pad] = jnp.zeros((cin, pad), cdt)
    xin_ref[:, pad + lout:l] = jnp.zeros((cin, l - pad - lout), cdt)
    y1_ref[:, 0:pad] = jnp.zeros((cmid, pad), cdt)
    y1_ref[:, pad + lout:l] = jnp.zeros((cmid, l - pad - lout), cdt)

    # ---- bilinear upsample + F.pad + 1-px halo: ONE MXU matmul for all images ----
    up_all = jnp.dot(x1_ref[...], kup_ref[...],
                     preferred_element_type=f32)          # (nb*c1, s)
    up_all = up_all.astype(cdt)

    # ---- build the concat([x2, up]) slab: channels on sublanes, image*spatial on lanes ----
    for n in range(nb):
        xin_ref[0:c2, pad + n * s:pad + (n + 1) * s] = x2_ref[n * c2:(n + 1) * c2, :]
        xin_ref[c2:cin, pad + n * s:pad + (n + 1) * s] = up_all[n * c1:(n + 1) * c1, :]

    # ---- conv1 (3x3, pad=1): 9 accumulating lane-dense tap matmuls on the zero-haloed slab
    acc = jnp.zeros((cmid, lout), f32)
    for ky in range(3):
        for kx in range(3):
            tap = ky * 3 + kx
            st = ky * wp + kx                      # = pad + (ky-1)*Wp + (kx-1)
            acc = acc + jnp.dot(w1_ref[tap], xin_ref[:, st:st + lout],
                                preferred_element_type=f32)
    valid = mask_ref[...] > 0.5
    # mask (via where) zeroes the per-image halo AND any value computed from guard/neighbor
    # reads at discarded positions, so conv2's halo reads are exactly zero.
    y1 = jnp.where(valid, jnp.maximum(acc * s1_ref[...] + t1_ref[...], 0.0), 0.0)
    y1_ref[:, pad:pad + lout] = y1.astype(cdt)

    # ---- conv2 (3x3, pad=1): 9 accumulating tap matmuls, result is natively (Cout, Hp*Wp)
    acc2 = jnp.zeros((cout, lout), f32)
    for ky in range(3):
        for kx in range(3):
            tap = ky * 3 + kx
            st = ky * wp + kx
            acc2 = acc2 + jnp.dot(w2_ref[tap], y1_ref[:, st:st + lout],
                                  preferred_element_type=f32)
    out = jnp.maximum(acc2 * s2_ref[...] + t2_ref[...], 0.0)
    for n in range(nb):
        o_ref[n * cout:(n + 1) * cout, :] = out[:, n * s:(n + 1) * s]


def up_forward(x1_nchw, x2_nchw, params, *, compute_dtype=jnp.bfloat16):
    """Pallas implementation of Up.forward(x1, x2) with bilinear=True (eval-mode BN)."""
    x1_nchw = jnp.asarray(x1_nchw, jnp.float32)
    x2_nchw = jnp.asarray(x2_nchw, jnp.float32)
    N, C1, H1, W1 = x1_nchw.shape
    _, C2, H2, W2 = x2_nchw.shape
    Hu, Wu = 2 * H1, 2 * W1
    diffY, diffX = H2 - Hu, W2 - Wu
    assert diffY >= 0 and diffX >= 0, "upsampled x1 must not be larger than x2"
    pad_top, pad_left = diffY // 2, diffX // 2
    Hp, Wp = H2 + 2, W2 + 2
    S = Hp * Wp
    HW1 = H1 * W1
    Cin = C1 + C2
    Cmid = params["conv1_w"].shape[0]
    Cout = params["conv2_w"].shape[0]
    assert params["conv1_w"].shape[1] == Cin

    # ---- batch folding: whole batch per step on 1-TC chips, 2 fat steps on v7x ----
    if _two_tensorcores() and N >= 2 and N % 2 == 0:
        NB = N // 2
    else:
        NB = N
    G = N // NB
    PAD = Wp + 1
    Lout = NB * S
    L = 2 * PAD + Lout

    # ---- activations: channels-on-sublanes, flat padded spatial on lanes, bf16 operands ----
    x1_flat = x1_nchw.reshape(N * C1, HW1).astype(compute_dtype)
    x2_pad = jnp.pad(x2_nchw, ((0, 0), (0, 0), (1, 1), (1, 1)))        # 1-px conv halo
    x2_flat = x2_pad.reshape(N * C2, S).astype(compute_dtype)

    # ---- fused upsample/pad/halo matrix: up_flat = x1_flat @ kron(Ahp^T, Awp^T) ----
    ah = _bilinear_matrix(Hu, H1)
    aw = _bilinear_matrix(Wu, W1)
    ahp = np.zeros((Hp, H1), np.float32)
    ahp[1 + pad_top:1 + pad_top + Hu, :] = ah
    awp = np.zeros((Wp, W1), np.float32)
    awp[1 + pad_left:1 + pad_left + Wu, :] = aw
    kup = jnp.asarray(np.kron(ahp.T, awp.T), dtype=compute_dtype)      # (H1*W1, Hp*Wp)

    # ---- per-tap conv weights (OIHW -> (9, O, I)) and folded eval-mode BN scale/offset ----
    eps = 1e-5
    w1 = jnp.transpose(params["conv1_w"], (2, 3, 0, 1)).reshape(9, Cmid, Cin).astype(compute_dtype)
    w2 = jnp.transpose(params["conv2_w"], (2, 3, 0, 1)).reshape(9, Cout, Cmid).astype(compute_dtype)
    s1 = (params["bn1_gamma"] / jnp.sqrt(params["bn1_var"] + eps)).astype(jnp.float32)
    t1 = (params["bn1_beta"] + (params["conv1_b"] - params["bn1_mean"]) * s1).astype(jnp.float32)
    s2 = (params["bn2_gamma"] / jnp.sqrt(params["bn2_var"] + eps)).astype(jnp.float32)
    t2 = (params["bn2_beta"] + (params["conv2_b"] - params["bn2_mean"]) * s2).astype(jnp.float32)

    # halo mask: 1 at valid output pixels, 0 at the 1-px halo of every image in a step
    m = np.zeros((Hp, Wp), np.float32)
    m[1:1 + H2, 1:1 + W2] = 1.0
    mask = jnp.asarray(np.tile(m.reshape(-1), NB).reshape(1, Lout))

    kernel = functools.partial(_up_kernel, nb=NB, c1=C1, c2=C2, wp=Wp)

    out_flat = pl.pallas_call(
        kernel,
        out_shape=jax.ShapeDtypeStruct((N * Cout, S), jnp.float32),
        grid_spec=pltpu.PrefetchScalarGridSpec(
            num_scalar_prefetch=0,
            grid=(G,),
            in_specs=[
                pl.BlockSpec((NB * C1, HW1), lambda b: (b, 0)),
                pl.BlockSpec((NB * C2, S), lambda b: (b, 0)),
                pl.BlockSpec((HW1, S), lambda b: (0, 0)),
                pl.BlockSpec((9, Cmid, Cin), lambda b: (0, 0, 0)),
                pl.BlockSpec((Cmid, 1), lambda b: (0, 0)),
                pl.BlockSpec((Cmid, 1), lambda b: (0, 0)),
                pl.BlockSpec((9, Cout, Cmid), lambda b: (0, 0, 0)),
                pl.BlockSpec((Cout, 1), lambda b: (0, 0)),
                pl.BlockSpec((Cout, 1), lambda b: (0, 0)),
                pl.BlockSpec((1, Lout), lambda b: (0, 0)),
            ],
            out_specs=pl.BlockSpec((NB * Cout, S), lambda b: (b, 0)),
            scratch_shapes=[
                pltpu.VMEM((Cin, L), compute_dtype),     # concat([x2, up]) slab + guard gutters
                pltpu.VMEM((Cmid, L), compute_dtype),    # conv1-output slab + guard gutters
            ],
        ),
        compiler_params=pltpu.CompilerParams(dimension_semantics=("parallel",)),
    )(x1_flat, x2_flat, kup, w1, s1.reshape(Cmid, 1), t1.reshape(Cmid, 1),
      w2, s2.reshape(Cout, 1), t2.reshape(Cout, 1), mask)

    # output is already NCHW; just strip the 1-px halo (cheap XLA slice, no transpose).
    return out_flat.reshape(N, Cout, Hp, Wp)[:, :, 1:1 + H2, 1:1 + W2]


def up_reference(x1_nchw, x2_nchw, params):
    """Pure-JAX f32 reference (separable bilinear upsample + lax.conv) for verification."""
    x1 = jnp.transpose(x1_nchw, (0, 2, 3, 1)).astype(jnp.float32)
    x2 = jnp.transpose(x2_nchw, (0, 2, 3, 1)).astype(jnp.float32)
    N, H1, W1, C1 = x1.shape
    _, H2, W2, C2 = x2.shape
    Hu, Wu = 2 * H1, 2 * W1
    ah = jnp.asarray(_bilinear_matrix(Hu, H1))
    aw = jnp.asarray(_bilinear_matrix(Wu, W1))
    up = jnp.einsum('ph,nhwc->npwc', ah, x1)
    up = jnp.einsum('qw,npwc->npqc', aw, up)
    diffY, diffX = H2 - Hu, W2 - Wu
    up = jnp.pad(up, ((0, 0), (diffY // 2, diffY - diffY // 2),
                      (diffX // 2, diffX - diffX // 2), (0, 0)))
    x = jnp.concatenate([x2, up], axis=-1)

    eps = 1e-5

    def conv_bn_relu(x, w_oihw, b, g, be, m, v):
        w = jnp.transpose(w_oihw, (2, 3, 1, 0))
        y = lax.conv_general_dilated(x, w, (1, 1), 'SAME',
                                     dimension_numbers=('NHWC', 'HWIO', 'NHWC')) + b
        y = (y - m) / jnp.sqrt(v + eps) * g + be
        return jnp.maximum(y, 0.0)

    y = conv_bn_relu(x, params["conv1_w"], params["conv1_b"], params["bn1_gamma"],
                     params["bn1_beta"], params["bn1_mean"], params["bn1_var"])
    y = conv_bn_relu(y, params["conv2_w"], params["conv2_b"], params["bn2_gamma"],
                     params["bn2_beta"], params["bn2_mean"], params["bn2_var"])
    return jnp.transpose(y, (0, 3, 1, 2))


if __name__ == "__main__":
    key = jax.random.PRNGKey(0)
    keys = jax.random.split(key, 12)

    # Up(in_channels=16, out_channels=8, bilinear=True)
    N, C1, H1, W1 = 2, 8, 8, 8       # x1: feature map from the down path
    C2, H2, W2 = 8, 16, 16           # x2: skip connection (2x spatial)
    Cin, Cout = C1 + C2, 8

    x1 = jax.random.normal(keys[0], (N, C1, H1, W1), jnp.float32)
    x2 = jax.random.normal(keys[1], (N, C2, H2, W2), jnp.float32)

    params = {
        "conv1_w": 0.1 * jax.random.normal(keys[2], (Cout, Cin, 3, 3), jnp.float32),
        "conv1_b": 0.1 * jax.random.normal(keys[3], (Cout,), jnp.float32),
        "bn1_gamma": 1.0 + 0.1 * jax.random.normal(keys[4], (Cout,), jnp.float32),
        "bn1_beta": 0.1 * jax.random.normal(keys[5], (Cout,), jnp.float32),
        "bn1_mean": 0.1 * jax.random.normal(keys[6], (Cout,), jnp.float32),
        "bn1_var": 1.0 + 0.1 * jnp.abs(jax.random.normal(keys[7], (Cout,), jnp.float32)),
        "conv2_w": 0.1 * jax.random.normal(keys[8], (Cout, Cout, 3, 3), jnp.float32),
        "conv2_b": 0.1 * jax.random.normal(keys[9], (Cout,), jnp.float32),
        "bn2_gamma": 1.0 + 0.1 * jax.random.normal(keys[10], (Cout,), jnp.float32),
        "bn2_beta": 0.1 * jax.random.normal(keys[11], (Cout,), jnp.float32),
        "bn2_mean": jnp.zeros((Cout,), jnp.float32),
        "bn2_var": jnp.ones((Cout,), jnp.float32),
    }

    out = jax.block_until_ready(up_forward(x1, x2, params))
    ref = jax.block_until_ready(up_reference(x1, x2, params))

    assert out.shape == (N, Cout, H2, W2), out.shape
    # bf16 MXU operands (per the perf review) vs. an all-f32 reference -> bf16-level tolerance;
    # any structural bug (wrong tap offset / mask / concat order) produces O(0.3+) errors.
    err = float(jnp.max(jnp.abs(out - ref)))
    if not (err < 8e-2):
        raise AssertionError(f"mismatch, max abs err = {err}")
    print("KERNEL_OK")
</pallas_src>

<mosaic_0001>
module attributes {stable_mosaic.version = 11 : i64} {
  func.func @_up_kernel(%arg0: i32, %arg1: memref<16x64xbf16, #tpu.memory_space<vmem>>, %arg2: memref<16x324xbf16, #tpu.memory_space<vmem>>, %arg3: memref<64x324xbf16, #tpu.memory_space<vmem>>, %arg4: memref<9x8x16xbf16, #tpu.memory_space<vmem>>, %arg5: memref<8x1xf32, #tpu.memory_space<vmem>>, %arg6: memref<8x1xf32, #tpu.memory_space<vmem>>, %arg7: memref<9x8x8xbf16, #tpu.memory_space<vmem>>, %arg8: memref<8x1xf32, #tpu.memory_space<vmem>>, %arg9: memref<8x1xf32, #tpu.memory_space<vmem>>, %arg10: memref<1x648xf32, #tpu.memory_space<vmem>>, %arg11: memref<16x324xf32, #tpu.memory_space<vmem>>, %arg12: memref<16x686xbf16, #tpu.memory_space<vmem>>, %arg13: memref<8x686xbf16, #tpu.memory_space<vmem>>) attributes {dimension_semantics = [#tpu.dimension_semantics<parallel>], iteration_bounds = array<i64: 1>, scalar_prefetch = 0 : i64, scratch_operands = 2 : i64, tpu.core_type = #tpu.core_type<tc>, window_params = [{transform_indices = @transform_0, window_bounds = array<i64: 16, 64>}, {transform_indices = @transform_1, window_bounds = array<i64: 16, 324>}, {pipeline_mode = #tpu.pipeline_mode<synchronous>, transform_indices = @transform_2, window_bounds = array<i64: 64, 324>}, {pipeline_mode = #tpu.pipeline_mode<synchronous>, transform_indices = @transform_3, window_bounds = array<i64: 9, 8, 16>}, {pipeline_mode = #tpu.pipeline_mode<synchronous>, transform_indices = @transform_4, window_bounds = array<i64: 8, 1>}, {pipeline_mode = #tpu.pipeline_mode<synchronous>, transform_indices = @transform_5, window_bounds = array<i64: 8, 1>}, {pipeline_mode = #tpu.pipeline_mode<synchronous>, transform_indices = @transform_6, window_bounds = array<i64: 9, 8, 8>}, {pipeline_mode = #tpu.pipeline_mode<synchronous>, transform_indices = @transform_7, window_bounds = array<i64: 8, 1>}, {pipeline_mode = #tpu.pipeline_mode<synchronous>, transform_indices = @transform_8, window_bounds = array<i64: 8, 1>}, {pipeline_mode = #tpu.pipeline_mode<synchronous>, transform_indices = @transform_9, window_bounds = array<i64: 1, 648>}, {transform_indices = @transform_10, window_bounds = array<i64: 16, 324>}]} {
    %cst = arith.constant 0.000000e+00 : bf16
    %0 = vector.broadcast %cst : bf16 to vector<16x19xbf16>
    %c0 = arith.constant 0 : index
    %c0_0 = arith.constant 0 : index
    %1 = vector.load %arg12[%c0, %c0_0] : memref<16x686xbf16, #tpu.memory_space<vmem>>, vector<16x19xbf16>
    tpu.vector_store %arg12[%c0, %c0_0], %0 {strides = array<i32>} : memref<16x686xbf16, #tpu.memory_space<vmem>>, vector<16x19xbf16>,
    %cst_1 = arith.constant 0.000000e+00 : bf16
    %2 = vector.broadcast %cst_1 : bf16 to vector<16x19xbf16>
    %c0_2 = arith.constant 0 : index
    %c667 = arith.constant 667 : index
    %3 = vector.load %arg12[%c0_2, %c667] : memref<16x686xbf16, #tpu.memory_space<vmem>>, vector<16x19xbf16>
    tpu.vector_store %arg12[%c0_2, %c667], %2 {strides = array<i32>} : memref<16x686xbf16, #tpu.memory_space<vmem>>, vector<16x19xbf16>,
    %cst_3 = arith.constant 0.000000e+00 : bf16
    %4 = vector.broadcast %cst_3 : bf16 to vector<8x19xbf16>
    %c0_4 = arith.constant 0 : index
    %c0_5 = arith.constant 0 : index
    %5 = vector.load %arg13[%c0_4, %c0_5] : memref<8x686xbf16, #tpu.memory_space<vmem>>, vector<8x19xbf16>
    tpu.vector_store %arg13[%c0_4, %c0_5], %4 {strides = array<i32>} : memref<8x686xbf16, #tpu.memory_space<vmem>>, vector<8x19xbf16>,
    %cst_6 = arith.constant 0.000000e+00 : bf16
    %6 = vector.broadcast %cst_6 : bf16 to vector<8x19xbf16>
    %c0_7 = arith.constant 0 : index
    %c667_8 = arith.constant 667 : index
    %7 = vector.load %arg13[%c0_7, %c667_8] : memref<8x686xbf16, #tpu.memory_space<vmem>>, vector<8x19xbf16>
    tpu.vector_store %arg13[%c0_7, %c667_8], %6 {strides = array<i32>} : memref<8x686xbf16, #tpu.memory_space<vmem>>, vector<8x19xbf16>,
    %c0_9 = arith.constant 0 : index
    %c0_10 = arith.constant 0 : index
    %8 = vector.load %arg1[%c0_9, %c0_10] : memref<16x64xbf16, #tpu.memory_space<vmem>>, vector<16x64xbf16>
    %c0_11 = arith.constant 0 : index
    %c0_12 = arith.constant 0 : index
    %9 = vector.load %arg3[%c0_11, %c0_12] : memref<64x324xbf16, #tpu.memory_space<vmem>>, vector<64x324xbf16>
    %cst_13 = arith.constant dense<0.000000e+00> : vector<16x324xf32>
    %10 = tpu.matmul %8, %9, %cst_13 {dimension_numbers = #tpu.dot_dimension_numbers<[1], [0], [0], [1], [0, 0, 1, 1], [], []>} : vector<16x64xbf16>, vector<64x324xbf16>, vector<16x324xf32> -> vector<16x324xf32>
    %11 = arith.truncf %10 : vector<16x324xf32> to vector<16x324xbf16>
    %c0_14 = arith.constant 0 : index
    %c0_15 = arith.constant 0 : index
    %12 = vector.load %arg2[%c0_14, %c0_15] : memref<16x324xbf16, #tpu.memory_space<vmem>>, vector<8x324xbf16>
    %c0_16 = arith.constant 0 : index
    %c19 = arith.constant 19 : index
    %13 = vector.load %arg12[%c0_16, %c19] : memref<16x686xbf16, #tpu.memory_space<vmem>>, vector<8x324xbf16>
    tpu.vector_store %arg12[%c0_16, %c19], %12 {strides = array<i32>} : memref<16x686xbf16, #tpu.memory_space<vmem>>, vector<8x324xbf16>,
    %14 = vector.extract_strided_slice %11 {offsets = [0, 0], sizes = [8, 324], strides = [1, 1]} : vector<16x324xbf16> to vector<8x324xbf16>
    %c8 = arith.constant 8 : index
    %c19_17 = arith.constant 19 : index
    %15 = vector.load %arg12[%c8, %c19_17] : memref<16x686xbf16, #tpu.memory_space<vmem>>, vector<8x324xbf16>
    tpu.vector_store %arg12[%c8, %c19_17], %14 {strides = array<i32>} : memref<16x686xbf16, #tpu.memory_space<vmem>>, vector<8x324xbf16>,
    %c8_18 = arith.constant 8 : index
    %c0_19 = arith.constant 0 : index
    %16 = vector.load %arg2[%c8_18, %c0_19] : memref<16x324xbf16, #tpu.memory_space<vmem>>, vector<8x324xbf16>
    %c0_20 = arith.constant 0 : index
    %c343 = arith.constant 343 : index
    %17 = vector.load %arg12[%c0_20, %c343] : memref<16x686xbf16, #tpu.memory_space<vmem>>, vector<8x324xbf16>
    tpu.vector_store %arg12[%c0_20, %c343], %16 {strides = array<i32>} : memref<16x686xbf16, #tpu.memory_space<vmem>>, vector<8x324xbf16>,
    %18 = vector.extract_strided_slice %11 {offsets = [8, 0], sizes = [8, 324], strides = [1, 1]} : vector<16x324xbf16> to vector<8x324xbf16>
    %c8_21 = arith.constant 8 : index
    %c343_22 = arith.constant 343 : index
    %19 = vector.load %arg12[%c8_21, %c343_22] : memref<16x686xbf16, #tpu.memory_space<vmem>>, vector<8x324xbf16>
    tpu.vector_store %arg12[%c8_21, %c343_22], %18 {strides = array<i32>} : memref<16x686xbf16, #tpu.memory_space<vmem>>, vector<8x324xbf16>,
    %cst_23 = arith.constant 0.000000e+00 : f32
    %20 = vector.broadcast %cst_23 : f32 to vector<8x648xf32>
    %c0_24 = arith.constant 0 : index
    %c0_25 = arith.constant 0 : index
    %c0_26 = arith.constant 0 : index
    %21 = vector.load %arg4[%c0_24, %c0_25, %c0_26] : memref<9x8x16xbf16, #tpu.memory_space<vmem>>, vector<1x8x16xbf16>
    %22 = vector.shape_cast %21 : vector<1x8x16xbf16> to vector<8x16xbf16>
    %c0_27 = arith.constant 0 : index
    %c0_28 = arith.constant 0 : index
    %23 = vector.load %arg12[%c0_27, %c0_28] : memref<16x686xbf16, #tpu.memory_space<vmem>>, vector<16x648xbf16>
    %cst_29 = arith.constant dense<0.000000e+00> : vector<8x648xf32>
    %24 = tpu.matmul %22, %23, %cst_29 {dimension_numbers = #tpu.dot_dimension_numbers<[1], [0], [0], [1], [0, 0, 1, 1], [], []>} : vector<8x16xbf16>, vector<16x648xbf16>, vector<8x648xf32> -> vector<8x648xf32>
    %25 = arith.addf %20, %24 : vector<8x648xf32>
    %c1 = arith.constant 1 : index
    %c0_30 = arith.constant 0 : index
    %c0_31 = arith.constant 0 : index
    %26 = vector.load %arg4[%c1, %c0_30, %c0_31] : memref<9x8x16xbf16, #tpu.memory_space<vmem>>, vector<1x8x16xbf16>
    %27 = vector.shape_cast %26 : vector<1x8x16xbf16> to vector<8x16xbf16>
    %c0_32 = arith.constant 0 : index
    %c1_33 = arith.constant 1 : index
    %28 = vector.load %arg12[%c0_32, %c1_33] : memref<16x686xbf16, #tpu.memory_space<vmem>>, vector<16x648xbf16>
    %cst_34 = arith.constant dense<0.000000e+00> : vector<8x648xf32>
    %29 = tpu.matmul %27, %28, %cst_34 {dimension_numbers = #tpu.dot_dimension_numbers<[1], [0], [0], [1], [0, 0, 1, 1], [], []>} : vector<8x16xbf16>, vector<16x648xbf16>, vector<8x648xf32> -> vector<8x648xf32>
    %30 = arith.addf %25, %29 : vector<8x648xf32>
    %c2 = arith.constant 2 : index
    %c0_35 = arith.constant 0 : index
    %c0_36 = arith.constant 0 : index
    %31 = vector.load %arg4[%c2, %c0_35, %c0_36] : memref<9x8x16xbf16, #tpu.memory_space<vmem>>, vector<1x8x16xbf16>
    %32 = vector.shape_cast %31 : vector<1x8x16xbf16> to vector<8x16xbf16>
    %c0_37 = arith.constant 0 : index
    %c2_38 = arith.constant 2 : index
    %33 = vector.load %arg12[%c0_37, %c2_38] : memref<16x686xbf16, #tpu.memory_space<vmem>>, vector<16x648xbf16>
    %cst_39 = arith.constant dense<0.000000e+00> : vector<8x648xf32>
    %34 = tpu.matmul %32, %33, %cst_39 {dimension_numbers = #tpu.dot_dimension_numbers<[1], [0], [0], [1], [0, 0, 1, 1], [], []>} : vector<8x16xbf16>, vector<16x648xbf16>, vector<8x648xf32> -> vector<8x648xf32>
    %35 = arith.addf %30, %34 : vector<8x648xf32>
    %c3 = arith.constant 3 : index
    %c0_40 = arith.constant 0 : index
    %c0_41 = arith.constant 0 : index
    %36 = vector.load %arg4[%c3, %c0_40, %c0_41] : memref<9x8x16xbf16, #tpu.memory_space<vmem>>, vector<1x8x16xbf16>
    %37 = vector.shape_cast %36 : vector<1x8x16xbf16> to vector<8x16xbf16>
    %c0_42 = arith.constant 0 : index
    %c18 = arith.constant 18 : index
    %38 = vector.load %arg12[%c0_42, %c18] : memref<16x686xbf16, #tpu.memory_space<vmem>>, vector<16x648xbf16>
    %cst_43 = arith.constant dense<0.000000e+00> : vector<8x648xf32>
    %39 = tpu.matmul %37, %38, %cst_43 {dimension_numbers = #tpu.dot_dimension_numbers<[1], [0], [0], [1], [0, 0, 1, 1], [], []>} : vector<8x16xbf16>, vector<16x648xbf16>, vector<8x648xf32> -> vector<8x648xf32>
    %40 = arith.addf %35, %39 : vector<8x648xf32>
    %c4 = arith.constant 4 : index
    %c0_44 = arith.constant 0 : index
    %c0_45 = arith.constant 0 : index
    %41 = vector.load %arg4[%c4, %c0_44, %c0_45] : memref<9x8x16xbf16, #tpu.memory_space<vmem>>, vector<1x8x16xbf16>
    %42 = vector.shape_cast %41 : vector<1x8x16xbf16> to vector<8x16xbf16>
    %c0_46 = arith.constant 0 : index
    %c19_47 = arith.constant 19 : index
    %43 = vector.load %arg12[%c0_46, %c19_47] : memref<16x686xbf16, #tpu.memory_space<vmem>>, vector<16x648xbf16>
    %cst_48 = arith.constant dense<0.000000e+00> : vector<8x648xf32>
    %44 = tpu.matmul %42, %43, %cst_48 {dimension_numbers = #tpu.dot_dimension_numbers<[1], [0], [0], [1], [0, 0, 1, 1], [], []>} : vector<8x16xbf16>, vector<16x648xbf16>, vector<8x648xf32> -> vector<8x648xf32>
    %45 = arith.addf %40, %44 : vector<8x648xf32>
    %c5 = arith.constant 5 : index
    %c0_49 = arith.constant 0 : index
    %c0_50 = arith.constant 0 : index
    %46 = vector.load %arg4[%c5, %c0_49, %c0_50] : memref<9x8x16xbf16, #tpu.memory_space<vmem>>, vector<1x8x16xbf16>
    %47 = vector.shape_cast %46 : vector<1x8x16xbf16> to vector<8x16xbf16>
    %c0_51 = arith.constant 0 : index
    %c20 = arith.constant 20 : index
    %48 = vector.load %arg12[%c0_51, %c20] : memref<16x686xbf16, #tpu.memory_space<vmem>>, vector<16x648xbf16>
    %cst_52 = arith.constant dense<0.000000e+00> : vector<8x648xf32>
    %49 = tpu.matmul %47, %48, %cst_52 {dimension_numbers = #tpu.dot_dimension_numbers<[1], [0], [0], [1], [0, 0, 1, 1], [], []>} : vector<8x16xbf16>, vector<16x648xbf16>, vector<8x648xf32> -> vector<8x648xf32>
    %50 = arith.addf %45, %49 : vector<8x648xf32>
    %c6 = arith.constant 6 : index
    %c0_53 = arith.constant 0 : index
    %c0_54 = arith.constant 0 : index
    %51 = vector.load %arg4[%c6, %c0_53, %c0_54] : memref<9x8x16xbf16, #tpu.memory_space<vmem>>, vector<1x8x16xbf16>
    %52 = vector.shape_cast %51 : vector<1x8x16xbf16> to vector<8x16xbf16>
    %c0_55 = arith.constant 0 : index
    %c36 = arith.constant 36 : index
    %53 = vector.load %arg12[%c0_55, %c36] : memref<16x686xbf16, #tpu.memory_space<vmem>>, vector<16x648xbf16>
    %cst_56 = arith.constant dense<0.000000e+00> : vector<8x648xf32>
    %54 = tpu.matmul %52, %53, %cst_56 {dimension_numbers = #tpu.dot_dimension_numbers<[1], [0], [0], [1], [0, 0, 1, 1], [], []>} : vector<8x16xbf16>, vector<16x648xbf16>, vector<8x648xf32> -> vector<8x648xf32>
    %55 = arith.addf %50, %54 : vector<8x648xf32>
    %c7 = arith.constant 7 : index
    %c0_57 = arith.constant 0 : index
    %c0_58 = arith.constant 0 : index
    %56 = vector.load %arg4[%c7, %c0_57, %c0_58] : memref<9x8x16xbf16, #tpu.memory_space<vmem>>, vector<1x8x16xbf16>
    %57 = vector.shape_cast %56 : vector<1x8x16xbf16> to vector<8x16xbf16>
    %c0_59 = arith.constant 0 : index
    %c37 = arith.constant 37 : index
    %58 = vector.load %arg12[%c0_59, %c37] : memref<16x686xbf16, #tpu.memory_space<vmem>>, vector<16x648xbf16>
    %cst_60 = arith.constant dense<0.000000e+00> : vector<8x648xf32>
    %59 = tpu.matmul %57, %58, %cst_60 {dimension_numbers = #tpu.dot_dimension_numbers<[1], [0], [0], [1], [0, 0, 1, 1], [], []>} : vector<8x16xbf16>, vector<16x648xbf16>, vector<8x648xf32> -> vector<8x648xf32>
    %60 = arith.addf %55, %59 : vector<8x648xf32>
    %c8_61 = arith.constant 8 : index
    %c0_62 = arith.constant 0 : index
    %c0_63 = arith.constant 0 : index
    %61 = vector.load %arg4[%c8_61, %c0_62, %c0_63] : memref<9x8x16xbf16, #tpu.memory_space<vmem>>, vector<1x8x16xbf16>
    %62 = vector.shape_cast %61 : vector<1x8x16xbf16> to vector<8x16xbf16>
    %c0_64 = arith.constant 0 : index
    %c38 = arith.constant 38 : index
    %63 = vector.load %arg12[%c0_64, %c38] : memref<16x686xbf16, #tpu.memory_space<vmem>>, vector<16x648xbf16>
    %cst_65 = arith.constant dense<0.000000e+00> : vector<8x648xf32>
    %64 = tpu.matmul %62, %63, %cst_65 {dimension_numbers = #tpu.dot_dimension_numbers<[1], [0], [0], [1], [0, 0, 1, 1], [], []>} : vector<8x16xbf16>, vector<16x648xbf16>, vector<8x648xf32> -> vector<8x648xf32>
    %65 = arith.addf %60, %64 : vector<8x648xf32>
    %c0_66 = arith.constant 0 : index
    %c0_67 = arith.constant 0 : index
    %66 = vector.load %arg10[%c0_66, %c0_67] : memref<1x648xf32, #tpu.memory_space<vmem>>, vector<1x648xf32>
    %cst_68 = arith.constant 5.000000e-01 : f32
    %67 = vector.broadcast %cst_68 : f32 to vector<1x648xf32>
    %68 = arith.cmpf ogt, %66, %67 : vector<1x648xf32>
    %c0_69 = arith.constant 0 : index
    %c0_70 = arith.constant 0 : index
    %69 = vector.load %arg5[%c0_69, %c0_70] : memref<8x1xf32, #tpu.memory_space<vmem>>, vector<8x1xf32>
    %70 = vector.broadcast %69 : vector<8x1xf32> to vector<8x648xf32>
    %71 = arith.mulf %65, %70 : vector<8x648xf32>
    %c0_71 = arith.constant 0 : index
    %c0_72 = arith.constant 0 : index
    %72 = vector.load %arg6[%c0_71, %c0_72] : memref<8x1xf32, #tpu.memory_space<vmem>>, vector<8x1xf32>
    %73 = vector.broadcast %72 : vector<8x1xf32> to vector<8x648xf32>
    %74 = arith.addf %71, %73 : vector<8x648xf32>
    %cst_73 = arith.constant 0.000000e+00 : f32
    %75 = vector.broadcast %cst_73 : f32 to vector<8x648xf32>
    %76 = arith.maximumf %74, %75 : vector<8x648xf32>
    %cst_74 = arith.constant 0.000000e+00 : f32
    %77 = vector.shape_cast %68 : vector<1x648xi1> to vector<1x648xi1>
    %78 = vector.broadcast %77 : vector<1x648xi1> to vector<8x648xi1>
    %79 = vector.broadcast %cst_74 : f32 to vector<8x648xf32>
    %80 = arith.select %78, %76, %79 : vector<8x648xi1>, vector<8x648xf32>
    %81 = arith.truncf %80 : vector<8x648xf32> to vector<8x648xbf16>
    %c0_75 = arith.constant 0 : index
    %c19_76 = arith.constant 19 : index
    %82 = vector.load %arg13[%c0_75, %c19_76] : memref<8x686xbf16, #tpu.memory_space<vmem>>, vector<8x648xbf16>
    tpu.vector_store %arg13[%c0_75, %c19_76], %81 {strides = array<i32>} : memref<8x686xbf16, #tpu.memory_space<vmem>>, vector<8x648xbf16>,
    %cst_77 = arith.constant 0.000000e+00 : f32
    %83 = vector.broadcast %cst_77 : f32 to vector<8x648xf32>
    %c0_78 = arith.constant 0 : index
    %c0_79 = arith.constant 0 : index
    %c0_80 = arith.constant 0 : index
    %84 = vector.load %arg7[%c0_78, %c0_79, %c0_80] : memref<9x8x8xbf16, #tpu.memory_space<vmem>>, vector<1x8x8xbf16>
    %85 = vector.shape_cast %84 : vector<1x8x8xbf16> to vector<8x8xbf16>
    %c0_81 = arith.constant 0 : index
    %c0_82 = arith.constant 0 : index
    %86 = vector.load %arg13[%c0_81, %c0_82] : memref<8x686xbf16, #tpu.memory_space<vmem>>, vector<8x648xbf16>
    %cst_83 = arith.constant dense<0.000000e+00> : vector<8x648xf32>
    %87 = tpu.matmul %85, %86, %cst_83 {dimension_numbers = #tpu.dot_dimension_numbers<[1], [0], [0], [1], [0, 0, 1, 1], [], []>} : vector<8x8xbf16>, vector<8x648xbf16>, vector<8x648xf32> -> vector<8x648xf32>
    %88 = arith.addf %83, %87 : vector<8x648xf32>
    %c1_84 = arith.constant 1 : index
    %c0_85 = arith.constant 0 : index
    %c0_86 = arith.constant 0 : index
    %89 = vector.load %arg7[%c1_84, %c0_85, %c0_86] : memref<9x8x8xbf16, #tpu.memory_space<vmem>>, vector<1x8x8xbf16>
    %90 = vector.shape_cast %89 : vector<1x8x8xbf16> to vector<8x8xbf16>
    %c0_87 = arith.constant 0 : index
    %c1_88 = arith.constant 1 : index
    %91 = vector.load %arg13[%c0_87, %c1_88] : memref<8x686xbf16, #tpu.memory_space<vmem>>, vector<8x648xbf16>
    %cst_89 = arith.constant dense<0.000000e+00> : vector<8x648xf32>
    %92 = tpu.matmul %90, %91, %cst_89 {dimension_numbers = #tpu.dot_dimension_numbers<[1], [0], [0], [1], [0, 0, 1, 1], [], []>} : vector<8x8xbf16>, vector<8x648xbf16>, vector<8x648xf32> -> vector<8x648xf32>
    %93 = arith.addf %88, %92 : vector<8x648xf32>
    %c2_90 = arith.constant 2 : index
    %c0_91 = arith.constant 0 : index
    %c0_92 = arith.constant 0 : index
    %94 = vector.load %arg7[%c2_90, %c0_91, %c0_92] : memref<9x8x8xbf16, #tpu.memory_space<vmem>>, vector<1x8x8xbf16>
    %95 = vector.shape_cast %94 : vector<1x8x8xbf16> to vector<8x8xbf16>
    %c0_93 = arith.constant 0 : index
    %c2_94 = arith.constant 2 : index
    %96 = vector.load %arg13[%c0_93, %c2_94] : memref<8x686xbf16, #tpu.memory_space<vmem>>, vector<8x648xbf16>
    %cst_95 = arith.constant dense<0.000000e+00> : vector<8x648xf32>
    %97 = tpu.matmul %95, %96, %cst_95 {dimension_numbers = #tpu.dot_dimension_numbers<[1], [0], [0], [1], [0, 0, 1, 1], [], []>} : vector<8x8xbf16>, vector<8x648xbf16>, vector<8x648xf32> -> vector<8x648xf32>
    %98 = arith.addf %93, %97 : vector<8x648xf32>
    %c3_96 = arith.constant 3 : index
    %c0_97 = arith.constant 0 : index
    %c0_98 = arith.constant 0 : index
    %99 = vector.load %arg7[%c3_96, %c0_97, %c0_98] : memref<9x8x8xbf16, #tpu.memory_space<vmem>>, vector<1x8x8xbf16>
    %100 = vector.shape_cast %99 : vector<1x8x8xbf16> to vector<8x8xbf16>
    %c0_99 = arith.constant 0 : index
    %c18_100 = arith.constant 18 : index
    %101 = vector.load %arg13[%c0_99, %c18_100] : memref<8x686xbf16, #tpu.memory_space<vmem>>, vector<8x648xbf16>
    %cst_101 = arith.constant dense<0.000000e+00> : vector<8x648xf32>
    %102 = tpu.matmul %100, %101, %cst_101 {dimension_numbers = #tpu.dot_dimension_numbers<[1], [0], [0], [1], [0, 0, 1, 1], [], []>} : vector<8x8xbf16>, vector<8x648xbf16>, vector<8x648xf32> -> vector<8x648xf32>
    %103 = arith.addf %98, %102 : vector<8x648xf32>
    %c4_102 = arith.constant 4 : index
    %c0_103 = arith.constant 0 : index
    %c0_104 = arith.constant 0 : index
    %104 = vector.load %arg7[%c4_102, %c0_103, %c0_104] : memref<9x8x8xbf16, #tpu.memory_space<vmem>>, vector<1x8x8xbf16>
    %105 = vector.shape_cast %104 : vector<1x8x8xbf16> to vector<8x8xbf16>
    %c0_105 = arith.constant 0 : index
    %c19_106 = arith.constant 19 : index
    %106 = vector.load %arg13[%c0_105, %c19_106] : memref<8x686xbf16, #tpu.memory_space<vmem>>, vector<8x648xbf16>
    %cst_107 = arith.constant dense<0.000000e+00> : vector<8x648xf32>
    %107 = tpu.matmul %105, %106, %cst_107 {dimension_numbers = #tpu.dot_dimension_numbers<[1], [0], [0], [1], [0, 0, 1, 1], [], []>} : vector<8x8xbf16>, vector<8x648xbf16>, vector<8x648xf32> -> vector<8x648xf32>
    %108 = arith.addf %103, %107 : vector<8x648xf32>
    %c5_108 = arith.constant 5 : index
    %c0_109 = arith.constant 0 : index
    %c0_110 = arith.constant 0 : index
    %109 = vector.load %arg7[%c5_108, %c0_109, %c0_110] : memref<9x8x8xbf16, #tpu.memory_space<vmem>>, vector<1x8x8xbf16>
    %110 = vector.shape_cast %109 : vector<1x8x8xbf16> to vector<8x8xbf16>
    %c0_111 = arith.constant 0 : index
    %c20_112 = arith.constant 20 : index
    %111 = vector.load %arg13[%c0_111, %c20_112] : memref<8x686xbf16, #tpu.memory_space<vmem>>, vector<8x648xbf16>
    %cst_113 = arith.constant dense<0.000000e+00> : vector<8x648xf32>
    %112 = tpu.matmul %110, %111, %cst_113 {dimension_numbers = #tpu.dot_dimension_numbers<[1], [0], [0], [1], [0, 0, 1, 1], [], []>} : vector<8x8xbf16>, vector<8x648xbf16>, vector<8x648xf32> -> vector<8x648xf32>
    %113 = arith.addf %108, %112 : vector<8x648xf32>
    %c6_114 = arith.constant 6 : index
    %c0_115 = arith.constant 0 : index
    %c0_116 = arith.constant 0 : index
    %114 = vector.load %arg7[%c6_114, %c0_115, %c0_116] : memref<9x8x8xbf16, #tpu.memory_space<vmem>>, vector<1x8x8xbf16>
    %115 = vector.shape_cast %114 : vector<1x8x8xbf16> to vector<8x8xbf16>
    %c0_117 = arith.constant 0 : index
    %c36_118 = arith.constant 36 : index
    %116 = vector.load %arg13[%c0_117, %c36_118] : memref<8x686xbf16, #tpu.memory_space<vmem>>, vector<8x648xbf16>
    %cst_119 = arith.constant dense<0.000000e+00> : vector<8x648xf32>
    %117 = tpu.matmul %115, %116, %cst_119 {dimension_numbers = #tpu.dot_dimension_numbers<[1], [0], [0], [1], [0, 0, 1, 1], [], []>} : vector<8x8xbf16>, vector<8x648xbf16>, vector<8x648xf32> -> vector<8x648xf32>
    %118 = arith.addf %113, %117 : vector<8x648xf32>
    %c7_120 = arith.constant 7 : index
    %c0_121 = arith.constant 0 : index
    %c0_122 = arith.constant 0 : index
    %119 = vector.load %arg7[%c7_120, %c0_121, %c0_122] : memref<9x8x8xbf16, #tpu.memory_space<vmem>>, vector<1x8x8xbf16>
    %120 = vector.shape_cast %119 : vector<1x8x8xbf16> to vector<8x8xbf16>
    %c0_123 = arith.constant 0 : index
    %c37_124 = arith.constant 37 : index
    %121 = vector.load %arg13[%c0_123, %c37_124] : memref<8x686xbf16, #tpu.memory_space<vmem>>, vector<8x648xbf16>
    %cst_125 = arith.constant dense<0.000000e+00> : vector<8x648xf32>
    %122 = tpu.matmul %120, %121, %cst_125 {dimension_numbers = #tpu.dot_dimension_numbers<[1], [0], [0], [1], [0, 0, 1, 1], [], []>} : vector<8x8xbf16>, vector<8x648xbf16>, vector<8x648xf32> -> vector<8x648xf32>
    %123 = arith.addf %118, %122 : vector<8x648xf32>
    %c8_126 = arith.constant 8 : index
    %c0_127 = arith.constant 0 : index
    %c0_128 = arith.constant 0 : index
    %124 = vector.load %arg7[%c8_126, %c0_127, %c0_128] : memref<9x8x8xbf16, #tpu.memory_space<vmem>>, vector<1x8x8xbf16>
    %125 = vector.shape_cast %124 : vector<1x8x8xbf16> to vector<8x8xbf16>
    %c0_129 = arith.constant 0 : index
    %c38_130 = arith.constant 38 : index
    %126 = vector.load %arg13[%c0_129, %c38_130] : memref<8x686xbf16, #tpu.memory_space<vmem>>, vector<8x648xbf16>
    %cst_131 = arith.constant dense<0.000000e+00> : vector<8x648xf32>
    %127 = tpu.matmul %125, %126, %cst_131 {dimension_numbers = #tpu.dot_dimension_numbers<[1], [0], [0], [1], [0, 0, 1, 1], [], []>} : vector<8x8xbf16>, vector<8x648xbf16>, vector<8x648xf32> -> vector<8x648xf32>
    %128 = arith.addf %123, %127 : vector<8x648xf32>
    %c0_132 = arith.constant 0 : index
    %c0_133 = arith.constant 0 : index
    %129 = vector.load %arg8[%c0_132, %c0_133] : memref<8x1xf32, #tpu.memory_space<vmem>>, vector<8x1xf32>
    %130 = vector.broadcast %129 : vector<8x1xf32> to vector<8x648xf32>
    %131 = arith.mulf %128, %130 : vector<8x648xf32>
    %c0_134 = arith.constant 0 : index
    %c0_135 = arith.constant 0 : index
    %132 = vector.load %arg9[%c0_134, %c0_135] : memref<8x1xf32, #tpu.memory_space<vmem>>, vector<8x1xf32>
    %133 = vector.broadcast %132 : vector<8x1xf32> to vector<8x648xf32>
    %134 = arith.addf %131, %133 : vector<8x648xf32>
    %cst_136 = arith.constant 0.000000e+00 : f32
    %135 = vector.broadcast %cst_136 : f32 to vector<8x648xf32>
    %136 = arith.maximumf %134, %135 : vector<8x648xf32>
    %137 = vector.extract_strided_slice %136 {offsets = [0, 0], sizes = [8, 324], strides = [1, 1]} : vector<8x648xf32> to vector<8x324xf32>
    %c0_137 = arith.constant 0 : index
    %c0_138 = arith.constant 0 : index
    %138 = vector.load %arg11[%c0_137, %c0_138] : memref<16x324xf32, #tpu.memory_space<vmem>>, vector<8x324xf32>
    tpu.vector_store %arg11[%c0_137, %c0_138], %137 {strides = array<i32>} : memref<16x324xf32, #tpu.memory_space<vmem>>, vector<8x324xf32>,
    %139 = vector.extract_strided_slice %136 {offsets = [0, 324], sizes = [8, 324], strides = [1, 1]} : vector<8x648xf32> to vector<8x324xf32>
    %c8_139 = arith.constant 8 : index
    %c0_140 = arith.constant 0 : index
    %140 = vector.load %arg11[%c8_139, %c0_140] : memref<16x324xf32, #tpu.memory_space<vmem>>, vector<8x324xf32>
    tpu.vector_store %arg11[%c8_139, %c0_140], %139 {strides = array<i32>} : memref<16x324xf32, #tpu.memory_space<vmem>>, vector<8x324xf32>,
    return
  }
  func.func @transform_0(%arg0: i32) -> (i32, i32) {
    %c0_i32 = arith.constant 0 : i32
    %c0_i32_0 = arith.constant 0 : i32
    return %arg0, %c0_i32 : i32, i32
  }
  func.func @transform_1(%arg0: i32) -> (i32, i32) {
    %c0_i32 = arith.constant 0 : i32
    %c0_i32_0 = arith.constant 0 : i32
    return %arg0, %c0_i32 : i32, i32
  }
  func.func @transform_2(%arg0: i32) -> (i32, i32) {
    %c0_i32 = arith.constant 0 : i32
    %c0_i32_0 = arith.constant 0 : i32
    %c0_i32_1 = arith.constant 0 : i32
    return %c0_i32, %c0_i32_0 : i32, i32
  }
  func.func @transform_3(%arg0: i32) -> (i32, i32, i32) {
    %c0_i32 = arith.constant 0 : i32
    %c0_i32_0 = arith.constant 0 : i32
    %c0_i32_1 = arith.constant 0 : i32
    %c0_i32_2 = arith.constant 0 : i32
    return %c0_i32, %c0_i32_0, %c0_i32_1 : i32, i32, i32
  }
  func.func @transform_4(%arg0: i32) -> (i32, i32) {
    %c0_i32 = arith.constant 0 : i32
    %c0_i32_0 = arith.constant 0 : i32
    %c0_i32_1 = arith.constant 0 : i32
    return %c0_i32, %c0_i32_0 : i32, i32
  }
  func.func @transform_5(%arg0: i32) -> (i32, i32) {
    %c0_i32 = arith.constant 0 : i32
    %c0_i32_0 = arith.constant 0 : i32
    %c0_i32_1 = arith.constant 0 : i32
    return %c0_i32, %c0_i32_0 : i32, i32
  }
  func.func @transform_6(%arg0: i32) -> (i32, i32, i32) {
    %c0_i32 = arith.constant 0 : i32
    %c0_i32_0 = arith.constant 0 : i32
    %c0_i32_1 = arith.constant 0 : i32
    %c0_i32_2 = arith.constant 0 : i32
    return %c0_i32, %c0_i32_0, %c0_i32_1 : i32, i32, i32
  }
  func.func @transform_7(%arg0: i32) -> (i32, i32) {
    %c0_i32 = arith.constant 0 : i32
    %c0_i32_0 = arith.constant 0 : i32
    %c0_i32_1 = arith.constant 0 : i32
    return %c0_i32, %c0_i32_0 : i32, i32
  }
  func.func @transform_8(%arg0: i32) -> (i32, i32) {
    %c0_i32 = arith.constant 0 : i32
    %c0_i32_0 = arith.constant 0 : i32
    %c0_i32_1 = arith.constant 0 : i32
    return %c0_i32, %c0_i32_0 : i32, i32
  }
  func.func @transform_9(%arg0: i32) -> (i32, i32) {
    %c0_i32 = arith.constant 0 : i32
    %c0_i32_0 = arith.constant 0 : i32
    %c0_i32_1 = arith.constant 0 : i32
    return %c0_i32, %c0_i32_0 : i32, i32
  }
  func.func @transform_10(%arg0: i32) -> (i32, i32) {
    %c0_i32 = arith.constant 0 : i32
    %c0_i32_0 = arith.constant 0 : i32
    return %arg0, %c0_i32 : i32, i32
  }
}

</mosaic_0001>

<bundles_post_ra>
// kernel: tpu_custom_call.1
= control target key start
LH: loop header
LB: loop body
LE: loop exit
PB: predicated region body
PF: predicated region fallthrough
CT: control target
= control target key end

     0   :  { %15 = vsyncpa [#allocation5], 0  ;;  %s4732_s0 = inlined_call_operand.vmem [shape: bf16[16,64], index: 0, kind: input, shape index: {}]   ;;  %s4733_s1 = inlined_call_operand.hbm [shape: bf16[16,324], index: 1, kind: input, shape index: {}]   ;;  %s4734_s2 = inlined_call_operand.vmem [shape: bf16[64,324], index: 2, kind: input, shape index: {}]   ;;  %s4735_s3 = inlined_call_operand.hbm [shape: bf16[9,8,16], index: 3, kind: input, shape index: {}]   ;;  %s4736_s4 = inlined_call_operand.vmem [shape: f32[8,1], index: 4, kind: input, shape index: {}]   ;;  %s4737_s5 = inlined_call_operand.vmem [shape: f32[8,1], index: 5, kind: input, shape index: {}]   ;;  %s4738_s6 = inlined_call_operand.vmem [shape: bf16[9,8,8], index: 6, kind: input, shape index: {}]   ;;  %s4739_s7 = inlined_call_operand.vmem [shape: f32[8,1], index: 7, kind: input, shape index: {}]   ;;  %s4740_s8 = inlined_call_operand.vmem [shape: f32[8,1], index: 8, kind: input, shape index: {}]   ;;  %s4741_s9 = inlined_call_operand.vmem [shape: f32[1,648], index: 9, kind: input, shape index: {}]   ;;  %s4742_s10 = inlined_call_operand.hbm [shape: f32[16,324], index: 10, kind: output, shape index: {}]  }
   0x1   :  { %16 = vsyncpa [#allocation8], 0 }
   0x2   :  { %17 = vsyncpa [#allocation6], 0  ;;  %s3897_s13 = smov [#allocation4]   ;;  %s3825_s17 = scalar_lea.hbm %s4733_s1, 384 }
   0x3   :  { %s25_s14 = sshll.u32 %s3897_s13, 4  ;;  %p3826_p0 = scmp.ne.s32.totalorder %s4733_s1, %s3825_s17  ;;  %s26_s14 = int_to_ptr.vmem [resolvable:$true] %s25_s14 }
   0x4   :  { %p3829_p1 = scmp.lt.u32.totalorder %s3825_s17, %s4733_s1 }
   0x6   :  { %p3831_p2 = pnand %p3829_p1, %p3826_p0 }
   0x8   :  { %3834 = shalt.err (!%p3831_p2)
}
   0x9   :  { %s3835_s22 = scalar_lea.vmem %s26_s14, 384  ;;  %p3840_p4 = scmp.lt.s32.totalorder %s26_s14, %s26_s14 }
   0xa   :  { %p3836_p3 = scmp.ne.s32.totalorder %s26_s14, %s3835_s22  ;;  %p3841_p5 = scmp.lt.s32.totalorder %s3835_s22, %s3835_s22 }
   0xc   :  { %p3842_p6 = por %p3841_p5, %p3840_p4 }
   0xe   :  { %p3843_p7 = pnand %p3842_p6, %p3836_p3 }
  0x10   :  { %3846 = shalt.err (!%p3843_p7)
}
  0x11   :  { %s3898_s23 = smov 192   ;;  %s3899_s24 = smov 12  }
  0x12   :  { %31 = dma.hbm_to_vmem [thread:$0]  %s4733_s1, 384, %s26_s14, [#allocation5], %s3898_s23, %s3898_s23, %s3899_s24  }
  0x13   :  { %s3900_s27 = smov [#allocation7]   ;;  %s3847_s11 = scalar_lea.hbm %s4735_s3, 576 }
  0x14   :  { %s39_s28 = sshll.u32 %s3900_s27, 4  ;;  %p3848_p8 = scmp.ne.s32.totalorder %s4735_s3, %s3847_s11  ;;  %s40_s28 = int_to_ptr.vmem [resolvable:$true] %s39_s28 }
  0x15   :  { %p3851_p9 = scmp.lt.u32.totalorder %s3847_s11, %s4735_s3 }
  0x17   :  { %p3853_p10 = pnand %p3851_p9, %p3848_p8 }
  0x19   :  { %3856 = shalt.err (!%p3853_p10)
}
  0x1a   :  { %s3857_s17 = scalar_lea.vmem %s40_s28, 576  ;;  %p3862_p12 = scmp.lt.s32.totalorder %s40_s28, %s40_s28 }
  0x1b   :  { %p3858_p11 = scmp.ne.s32.totalorder %s40_s28, %s3857_s17  ;;  %p3863_p13 = scmp.lt.s32.totalorder %s3857_s17, %s3857_s17 }
  0x1d   :  { %p3864_p0 = por %p3863_p13, %p3862_p12 }
  0x1f   :  { %p3865_p1 = pnand %p3864_p0, %p3858_p11 }
  0x21   :  { %3868 = shalt.err (!%p3865_p1)
}
  0x22   :  { %s3901_s1 = smov 64   ;;  %s3902_s14 = smov 4  }
  0x23   :  { %45 = dma.hbm_to_vmem [thread:$0]  %s4735_s3, 576, %s40_s28, [#allocation8], %s3901_s1, %s3901_s1, %s3902_s14  }
  0x24   :  { %3891 = dma.done.wait [#allocation5], 384  }
  0x25   :  { %3892 = vsyncadd [#allocation5], 4294966912 }
  0x26   :  { %3893 = dma.done.wait [#allocation8], 576  }
  0x27   :  { %3894 = vsyncadd [#allocation8], 4294966720  ;;  %v3903_v0 = vmov 0   ;;  %v3798_v1 = vld [vmem:[%s4734_s2 + $0x4] ss:$12 sps:$4 sm:$0xff]   ;;  %v251_v8 = vld [vmem:[#allocation4] sm:$0xff] }
  0x28   :  { %196 = vmatprep.mubr.bf16.mxu0 %v3903_v0  ;;  %1531 = vmatprep.mubr.bf16.mxu1 %v3903_v0  ;;  %v3800_v2 = vld [vmem:[%s4734_s2] ss:$12 sps:$4 sm:$0xff]   ;;  %v3801_v3 = vld [vmem:[%s4734_s2 + $0x1c] ss:$12 sps:$4 sm:$0xff]   ;;  %v3803_v4 = vld [vmem:[%s4734_s2 + $0x18] ss:$12 sps:$4 sm:$0xff]   ;;  %v3460_v10 = vcombine.high %v251_v8, %v251_v8  ;;  %v3459_v15 = vcombine.low %v251_v8, %v251_v8 }
  0x29   :  { %3796 = vset.pattern.permute.xlu0 %v3903_v0  ;;  %3797 = vset.pattern.permute.xlu1 %v3903_v0  ;;  %v3804_v5 = vld [vmem:[%s4734_s2 + $0x34] ss:$12 sps:$4 sm:$0xff]   ;;  %v3806_v6 = vld [vmem:[%s4734_s2 + $0x30] ss:$12 sps:$4 sm:$0xff]   ;;  %v3807_v7 = vld [vmem:[%s4734_s2 + $0x4c] ss:$12 sps:$4 sm:$0xff]  }
  0x2a   :  { %164 = vmatprep.subr.bf16.mxu0 %v3798_v1  ;;  %v3809_v9 = vld [vmem:[%s4734_s2 + $0x48] ss:$12 sps:$4 sm:$0xff]   ;;  %s3904_s16 = smov 19   ;;  %v3817_v11 = vld [vmem:[#allocation4 + $0x8] ss:$0 sps:$4 sm:$0xff]   ;;  %v3810_v12 = vld [vmem:[%s4732_s0] sm:$0xff]  }
  0x2b   :  { %165 = vmatpush1.bf16.msra.mxu0 %v3800_v2  ;;  %263 = vrot.lane.b32.xlu0 %v3460_v10, %s3904_s16  ;;  %vm160_vm0 = vcmask 523264   ;;  %v3811_v13 = vld [vmem:[%s4734_s2 + $0x8] ss:$12 sps:$4 sm:$0xff]   ;;  %v3905_v14 = vmov 0.0   ;;  %v3812_v17 = vld [vmem:[%s4734_s2 + $0x20] ss:$12 sps:$4 sm:$0xff]  }
  0x2c   :  { %166 = vmatprep.subr.bf16.mxu0 %v3801_v3  ;;  %v300_v16 = vld [vmem:[#allocation4 + $0xc] sm:$0xff]  ;;  %vm3906_vm1 = vmmov 0   ;;  %s3907_s22 = smov 87   ;;  %v3814_v20 = vld [vmem:[%s4734_s2 + $0x50] ss:$12 sps:$4 sm:$0xff]   ;;  %vm65_vm2 = vcmask 154624  }
  0x2d   :  { %v3462_v18 = vcombine.low %v300_v16, %v300_v16  ;;  %v3813_v19 = vld [vmem:[%s4734_s2 + $0x38] ss:$12 sps:$4 sm:$0xff]   ;;  %v3463_v21 = vcombine.high %v300_v16, %v300_v16  ;;  %66 = vst.msk [vmem:[#allocation2] sm:$0xff] %vm65_vm2, %v3903_v0  ;;  %vm276_vm3 = vcmask 707584   ;;  %vm273_vm4 = vcmask 1043608   ;;  %s3908_s2 = smov 127  }
  0x2e   :  { %vm323_vm5 = vcmask 1044152   ;;  %vm316_vm6 = vcmask 711680   ;;  %vm67_vm7 = vcmask 376024   ;;  %v3820_v44 = vld [vmem:[#allocation4 + $0x14] ss:$0 sps:$4 sm:$0xff]   ;;  %vm295_vm8 = vcmask 1047708  }
  0x2f   :  { %167 = vmatpush1.bf16.msra.mxu0 %v3803_v4  ;;  %265 = vrot.lane.b32.xlu0 %v3817_v11, %s3904_s16  ;;  %68 = vst.msk [vmem:[#allocation2 + $0x28] sm:$0xff] %vm67_vm7, %v3903_v0  ;;  %vm298_vm9 = vcmask 711684   ;;  %vm341_vm10 = vcmask 1048252   ;;  %vm327_vm11 = vcmask 216064   ;;  %vm345_vm12 = vcmask 220164   ;;  %s3909_s24 = smov 126  }
  0x30   :  { %168 = vmatprep.subr.bf16.mxu0 %v3804_v5  ;;  %s3910_s25 = smov 110   ;;  %s3911_s26 = smov 109   ;;  %vm374_vm13 = vcmask 1039360   ;;  %v355_v5 = vld [vmem:[#allocation7 + $0x4] sm:$0xf]  ;;  %vm386_vm14 = vcmask 130048  }
  0x31   :  { %s3912_s27 = smov 108   ;;  %s3913_s28 = smov 92   ;;  %vm653_vm15 = vcmask 1031168   ;;  %vm1601_vm7 = vcmask 736256  }
  0x32   :  { %s3914_s29 = smov 91   ;;  %s3915_s30 = smov 90  }
  0x33   :  { %169 = vmatpush1.bf16.msra.mxu0 %v3806_v6  ;;  %261 = vrot.lane.b32.xlu0 %v3459_v15, %s3904_s16 }
  0x34   :  { %170 = vmatprep.subr.bf16.mxu0 %v3807_v7 }
  0x37   :  { %171 = vmatpush1.bf16.msra.mxu0 %v3809_v9  ;;  %310 = vrot.lane.b32.xlu0 %v3462_v18, %s3907_s22 }
  0x38   :  { %3571 = vmatprep.subr.bf16.mxu0 %v3905_v14 }
  0x3a   :  { %3457 = vmatmul.mubr.msk.bf16.vlgmr.msra.gmra.mrb[0].mxu0 %vm160_vm0, %v3810_v12 }
  0x3b   :  { %3572 = vmatpush3.bf16.msra.mxu0 %v3811_v13  ;;  %3579 = vmatprep.mubr.msk.bf16.mxu0 %vm3906_vm1, %v3905_v14  ;;  %vm1127_vm1 = vcmask 883712  }
  0x3c   :  { %3573 = vmatprep.subr.bf16.mxu0 %v3905_v14  ;;  %312 = vrot.lane.b32.xlu0 %v3463_v21, %s3907_s22  ;;  %v347_v21 = vld [vmem:[#allocation7] sm:$0xf] }
  0x3f   :  { %3574 = vmatpush3.bf16.msra.mxu0 %v3812_v17 }
  0x40   :  { %3575 = vmatprep.subr.bf16.mxu0 %v3905_v14 }
  0x43   :  { %3576 = vmatpush3.bf16.msra.mxu0 %v3813_v19 }
  0x44   :  { %3577 = vmatprep.subr.bf16.mxu0 %v3905_v14 }
  0x47   :  { %3578 = vmatpush3.bf16.msra.mxu0 %v3814_v20 }
  0x4a   :  { %3580 = vmatmul.mubr.msk.bf16.vlgmr.msra.gmra.mrb[4].mxu0 %vm160_vm0, %v3810_v12  ;;  %vm969_vm0 = vcmask 891904  }
  0x4b   :  { %422 = vmatprep.mubr.bf16.mxu0 %v3903_v0 }
  0x9d   :  { %v264_v22 = vpop.permute.xlu0 %263 }
  0xa1   :  { %v266_v23 = vpop.permute.xlu0 %265 }
  0xa2   :  { %v269_v24 = vsel %vm65_vm2, %v264_v22, %v266_v23 }
  0xa3   :  { %277 = vst.msk [vmem:[#allocation2 + $0x10] sm:$0xf] %vm276_vm3, %v269_v24  ;;  %vm1285_vm3 = vcmask 752640  }
  0xa5   :  { %v262_v25 = vpop.permute.xlu0 %261 }
  0xa6   :  { %v268_v26 = vsel %vm65_vm2, %v262_v25, %v264_v22  ;;  %274 = vst.msk [vmem:[#allocation2] sm:$0xf] %vm273_vm4, %v262_v25 }
  0xa7   :  { %275 = vst [vmem:[#allocation2 + $0x8] sm:$0xf] %v268_v26 }
  0xa9   :  { %v311_v27 = vpop.permute.xlu0 %310 }
  0xaa   :  { %324 = vst.msk [vmem:[#allocation2 + $0x10] sm:$0xf] %vm323_vm5, %v311_v27  ;;  %vm811_vm5 = vcmask 900096  }
  0xae   :  { %v313_v28 = vpop.permute.xlu0 %312 }
  0xaf   :  { %v317_v29 = vsel %vm316_vm6, %v311_v27, %v313_v28 }
  0xb0   :  { %325 = vst [vmem:[#allocation2 + $0x18] sm:$0xf] %v317_v29 }
 0x10d   :  { %v198_v30 = vpop.f32.mrb[0].mxu0 }
 0x10e   :  { %v200_v31 = vpop.f32.mrb[1].mxu0 }
 0x10f   :  { %v202_v32 = vpop.f32.mrb[2].mxu0 }
 0x110   :  { %v248_v33 = vpack.c.bf16 %v202_v32, %v198_v30  ;;  %v204_v34 = vpop.f32.mrb[3].mxu0 }
 0x111   :  { %v249_v35 = vpack.c.bf16 %v204_v34, %v200_v31 }
 0x112   :  { %v281_v36 = vrot.slane %v248_v33, 4 }
 0x113   :  { %331 = vrot.lane.b32.xlu0 %v249_v35, %s3907_s22  ;;  %v282_v37 = vrot.slane %v249_v35, 4 }
 0x114   :  { %284 = vrot.lane.b32.xlu1 %v281_v36, %s3904_s16 }
 0x118   :  { %286 = vrot.lane.b32.xlu1 %v282_v37, %s3904_s16 }
 0x11d   :  { %v241_v38 = vpop.f32.mrb[4].mxu0 }
 0x11e   :  { %v3581_v39 = vpop.f32.mrb[5].mxu0 }
 0x11f   :  { %v244_v40 = vpop.f32.mrb[6].mxu0 }
 0x120   :  { %v250_v41 = vpack.c.bf16 %v244_v40, %v241_v38  ;;  %v3582_v42 = vpop.f32.mrb[7].mxu0  ;;  %v640_v38 = vld [vmem:[#allocation7 + $0x8] sm:$0xf] }
 0x122   :  { %v283_v43 = vrot.slane %v250_v41, 4 }
 0x124   :  { %288 = vrot.lane.b32.xlu1 %v283_v43, %s3904_s16 }
 0x128   :  { %329 = vrot.lane.b32.xlu1 %v248_v33, %s3907_s22 }
 0x12c   :  { %314 = vrot.lane.b32.xlu1 %v3820_v44, %s3907_s22 }
 0x130   :  { %333 = vrot.lane.b32.xlu1 %v250_v41, %s3907_s22 }
 0x185   :  { %v332_v52 = vpop.permute.xlu0 %331 }
 0x186   :  { %v285_v45 = vpop.permute.xlu1 %284 }
 0x187   :  { %296 = vst.msk [vmem:[#allocation2] sm:$0xf0] %vm295_vm8, %v285_v45 }
 0x18a   :  { %v287_v46 = vpop.permute.xlu1 %286 }
 0x18b   :  { %v290_v47 = vsel %vm65_vm2, %v285_v45, %v287_v46 }
 0x18c   :  { %297 = vst [vmem:[#allocation2 + $0x8] sm:$0xf0] %v290_v47 }
 0x18e   :  { %v4070_v51 = vld [vmem:[#allocation2] sm:$0xff] }
 0x193   :  { %v4065_v48 = vld [vmem:[#allocation2 + $0x8] sm:$0xff] }
 0x194   :  { %364 = vrot.lane.b32.xlu0 %v4065_v48, %s3908_s2 }
 0x196   :  { %v289_v49 = vpop.permute.xlu1 %288 }
 0x197   :  { %v291_v50 = vsel %vm65_vm2, %v287_v46, %v289_v49 }
 0x198   :  { %299 = vst.msk [vmem:[#allocation2 + $0x10] sm:$0xf0] %vm298_vm9, %v291_v50  ;;  %362 = vrot.lane.b32.xlu0 %v4070_v51, %s3908_s2  ;;  %vm69_vm9 = vcmask 150528  }
 0x199   :  { %70 = vst.msk [vmem:[#allocation3] sm:$0xf] %vm69_vm9, %v3903_v0  ;;  %vm71_vm9 = vcmask 371928  }
 0x19a   :  { %v330_v53 = vpop.permute.xlu1 %329  ;;  %72 = vst.msk [vmem:[#allocation3 + $0x14] sm:$0xf] %vm71_vm9, %v3903_v0 }
 0x19b   :  { %v335_v54 = vsel %vm316_vm6, %v330_v53, %v332_v52  ;;  %342 = vst.msk [vmem:[#allocation2 + $0x10] sm:$0xf0] %vm341_vm10, %v330_v53 }
 0x19c   :  { %343 = vst [vmem:[#allocation2 + $0x18] sm:$0xf0] %v335_v54 }
 0x19e   :  { %v315_v55 = vpop.permute.xlu1 %314 }
 0x19f   :  { %v318_v56 = vsel %vm316_vm6, %v313_v28, %v315_v55  ;;  %328 = vst.msk [vmem:[#allocation2 + $0x28] sm:$0xf] %vm327_vm11, %v315_v55 }
 0x1a0   :  { %326 = vst [vmem:[#allocation2 + $0x20] sm:$0xf] %v318_v56 }
 0x1a2   :  { %v334_v57 = vpop.permute.xlu1 %333  ;;  %v4076_v58 = vld [vmem:[#allocation2 + $0x10] sm:$0xff] }
 0x1a3   :  { %v336_v59 = vsel %vm316_vm6, %v332_v52, %v334_v57  ;;  %346 = vst.msk [vmem:[#allocation2 + $0x28] sm:$0xf0] %vm345_vm12, %v334_v57  ;;  %366 = vrot.lane.b32.xlu1 %v4076_v58, %s3908_s2  ;;  %v4082_v60 = vld [vmem:[#allocation2 + $0x18] sm:$0xff]  ;;  %vm1443_vm6 = vcmask 744448  }
 0x1a4   :  { %344 = vst [vmem:[#allocation2 + $0x20] sm:$0xf0] %v336_v59  ;;  %v1759_v59 = vld [vmem:[%s4737_s5] sm:$0xff] }
 0x1a7   :  { %368 = vrot.lane.b32.xlu1 %v4082_v60, %s3908_s2 }
 0x1aa   :  { %v4086_v61 = vld [vmem:[#allocation2 + $0x28] sm:$0xff] }
 0x1ab   :  { %372 = vrot.lane.b32.xlu1 %v4086_v61, %s3908_s2  ;;  %v4090_v62 = vld [vmem:[#allocation2 + $0x20] sm:$0xff] }
 0x1ac   :  { %370 = vrot.lane.b32.xlu0 %v4090_v62, %s3908_s2 }
 0x1af   :  { %645 = vrot.lane.b32.xlu1 %v4076_v58, %s3909_s24 }
 0x1b0   :  { %643 = vrot.lane.b32.xlu0 %v4065_v48, %s3909_s24 }
 0x1b3   :  { %647 = vrot.lane.b32.xlu1 %v4082_v60, %s3909_s24 }
 0x1b4   :  { %641 = vrot.lane.b32.xlu0 %v4070_v51, %s3909_s24 }
 0x1b7   :  { %651 = vrot.lane.b32.xlu1 %v4086_v61, %s3909_s24 }
 0x1b8   :  { %649 = vrot.lane.b32.xlu0 %v4090_v62, %s3909_s24 }
 0x1bb   :  { %803 = vrot.lane.b32.xlu1 %v4076_v58, %s3910_s25 }
 0x1bc   :  { %801 = vrot.lane.b32.xlu0 %v4065_v48, %s3910_s25 }
 0x1bf   :  { %805 = vrot.lane.b32.xlu1 %v4082_v60, %s3910_s25 }
 0x1c0   :  { %799 = vrot.lane.b32.xlu0 %v4070_v51, %s3910_s25 }
 0x1c3   :  { %809 = vrot.lane.b32.xlu1 %v4086_v61, %s3910_s25 }
 0x1c4   :  { %807 = vrot.lane.b32.xlu0 %v4090_v62, %s3910_s25 }
 0x1c7   :  { %961 = vrot.lane.b32.xlu1 %v4076_v58, %s3911_s26 }
 0x1c8   :  { %959 = vrot.lane.b32.xlu0 %v4065_v48, %s3911_s26 }
 0x1cb   :  { %963 = vrot.lane.b32.xlu1 %v4082_v60, %s3911_s26 }
 0x1cc   :  { %957 = vrot.lane.b32.xlu0 %v4070_v51, %s3911_s26 }
 0x1cf   :  { %967 = vrot.lane.b32.xlu1 %v4086_v61, %s3911_s26 }
 0x1d0   :  { %965 = vrot.lane.b32.xlu0 %v4090_v62, %s3911_s26 }
 0x1d3   :  { %1119 = vrot.lane.b32.xlu1 %v4076_v58, %s3912_s27 }
 0x1d4   :  { %1117 = vrot.lane.b32.xlu0 %v4065_v48, %s3912_s27 }
 0x1d7   :  { %1121 = vrot.lane.b32.xlu1 %v4082_v60, %s3912_s27 }
 0x1d8   :  { %1115 = vrot.lane.b32.xlu0 %v4070_v51, %s3912_s27 }
 0x1db   :  { %1125 = vrot.lane.b32.xlu1 %v4086_v61, %s3912_s27 }
 0x1dc   :  { %1123 = vrot.lane.b32.xlu0 %v4090_v62, %s3912_s27 }
 0x1df   :  { %1277 = vrot.lane.b32.xlu1 %v4076_v58, %s3913_s28 }
 0x1e0   :  { %1275 = vrot.lane.b32.xlu0 %v4065_v48, %s3913_s28 }
 0x1e3   :  { %1279 = vrot.lane.b32.xlu1 %v4082_v60, %s3913_s28 }
 0x1e4   :  { %1273 = vrot.lane.b32.xlu0 %v4070_v51, %s3913_s28 }
 0x1e7   :  { %1283 = vrot.lane.b32.xlu1 %v4086_v61, %s3913_s28 }
 0x1e8   :  { %1281 = vrot.lane.b32.xlu0 %v4090_v62, %s3913_s28 }
 0x1eb   :  { %1435 = vrot.lane.b32.xlu1 %v4076_v58, %s3914_s29 }
 0x1ec   :  { %1433 = vrot.lane.b32.xlu0 %v4065_v48, %s3914_s29 }
 0x1ef   :  { %1437 = vrot.lane.b32.xlu1 %v4082_v60, %s3914_s29 }
 0x1f0   :  { %1431 = vrot.lane.b32.xlu0 %v4070_v51, %s3914_s29 }
 0x1f3   :  { %1441 = vrot.lane.b32.xlu1 %v4086_v61, %s3914_s29 }
 0x1f4   :  { %1439 = vrot.lane.b32.xlu0 %v4090_v62, %s3914_s29 }
 0x1f7   :  { %1597 = vrot.lane.b32.xlu1 %v4090_v62, %s3915_s30 }
 0x1f8   :  { %1595 = vrot.lane.b32.xlu0 %v4082_v60, %s3915_s30 }
 0x1fb   :  { %1591 = vrot.lane.b32.xlu1 %v4065_v48, %s3915_s30 }
 0x1fc   :  { %1593 = vrot.lane.b32.xlu0 %v4076_v58, %s3915_s30 }
 0x1ff   :  { %1599 = vrot.lane.b32.xlu1 %v4086_v61, %s3915_s30 }
 0x200   :  { %1589 = vrot.lane.b32.xlu0 %v4070_v51, %s3915_s30 }
 0x203   :  { %1762 = vperm.xlu1 %3797, %v1759_v59  }
 0x206   :  { %v365_v63 = vpop.permute.xlu0 %364 }
 0x20a   :  { %v363_v1 = vpop.permute.xlu0 %362 }
 0x20b   :  { %v375_v4 = vsel %vm374_vm13, %v363_v1, %v365_v63 }
 0x215   :  { %v367_v2 = vpop.permute.xlu1 %366 }
 0x216   :  { %v376_v3 = vsel %vm374_vm13, %v365_v63, %v367_v2 }
 0x217   :  { %390 = vmatprep.subr.bf16.mxu0 %v376_v3 }
 0x218   :  { %391 = vmatpush1.bf16.msra.mxu0 %v375_v4 }
 0x219   :  { %v369_v6 = vpop.permute.xlu1 %368 }
 0x21a   :  { %v377_v10 = vsel %vm374_vm13, %v367_v2, %v369_v6  ;;  %v798_v2 = vld [vmem:[#allocation7 + $0xc] sm:$0xf] }
 0x21b   :  { %3465 = vmatmul.mubr.msk.bf16.vlgmr.msra.gmra.mrb[8].mxu0 %vm386_vm14, %v355_v5 }
 0x21c   :  { %463 = vmatprep.mubr.bf16.mxu0 %v3903_v0 }
 0x21d   :  { %v373_v7 = vpop.permute.xlu1 %372 }
 0x21e   :  { %v371_v8 = vpop.permute.xlu0 %370 }
 0x21f   :  { %v378_v9 = vsel %vm374_vm13, %v369_v6, %v371_v8  ;;  %v379_v13 = vsel %vm374_vm13, %v371_v8, %v373_v7 }
 0x220   :  { %431 = vmatprep.subr.bf16.mxu0 %v378_v9 }
 0x221   :  { %v646_v11 = vpop.permute.xlu1 %645  ;;  %432 = vmatpush1.bf16.msra.mxu0 %v377_v10 }
 0x222   :  { %472 = vmatprep.subr.bf16.mxu0 %v373_v7  ;;  %v644_v12 = vpop.permute.xlu0 %643 }
 0x223   :  { %v655_v28 = vsel %vm653_vm15, %v644_v12, %v646_v11 }
 0x224   :  { %3466 = vmatmul.mubr.msk.bf16.vlgmr.msra.gmra.mrb[12].mxu0 %vm386_vm14, %v355_v5 }
 0x225   :  { %v648_v14 = vpop.permute.xlu1 %647  ;;  %473 = vmatpush1.bf16.msra.mxu0 %v379_v13  ;;  %504 = vmatprep.mubr.bf16.mxu0 %v3903_v0 }
 0x226   :  { %516 = vmatprep.subr.bf16.mxu0 %v4065_v48  ;;  %v642_v15 = vpop.permute.xlu0 %641  ;;  %v656_v42 = vsel %vm653_vm15, %v646_v11, %v648_v14 }
 0x227   :  { %v654_v33 = vsel %vm653_vm15, %v642_v15, %v644_v12  ;;  %v4310_v12 = vld [vmem:[#allocation7 + $0x1c] sm:$0xf] }
 0x229   :  { %v652_v16 = vpop.permute.xlu1 %651 }
 0x22a   :  { %v650_v17 = vpop.permute.xlu0 %649 }
 0x22b   :  { %v657_v35 = vsel %vm653_vm15, %v648_v14, %v650_v17  ;;  %v658_v48 = vsel %vm653_vm15, %v650_v17, %v652_v16 }
 0x22c   :  { %3467 = vmatmul.mubr.msk.bf16.vlgmr.msra.gmra.mrb[16].mxu0 %vm386_vm14, %v355_v5 }
 0x22d   :  { %517 = vmatpush1.bf16.msra.mxu0 %v4070_v51  ;;  %v4190_v18 = vpop.permute.xlu1 %803  ;;  %548 = vmatprep.mubr.bf16.mxu0 %v3903_v0 }
 0x22e   :  { %557 = vmatprep.subr.bf16.mxu0 %v4082_v60  ;;  %v4194_v19 = vpop.permute.xlu0 %801 }
 0x22f   :  { %v813_v50 = vsel %vm811_vm5, %v4194_v19, %v4190_v18 }
 0x231   :  { %v4196_v20 = vpop.permute.xlu1 %805 }
 0x232   :  { %v800_v22 = vpop.permute.xlu0 %799  ;;  %v814_v5 = vsel %vm811_vm5, %v4190_v18, %v4196_v20 }
 0x233   :  { %v812_v57 = vsel %vm811_vm5, %v800_v22, %v4194_v19 }
 0x234   :  { %3468 = vmatmul.mubr.msk.bf16.vlgmr.msra.gmra.mrb[8].mxu0 %vm386_vm14, %v347_v21 }
 0x235   :  { %558 = vmatpush1.bf16.msra.mxu0 %v4076_v58  ;;  %v4200_v23 = vpop.permute.xlu1 %809  ;;  %589 = vmatprep.mubr.bf16.mxu0 %v3903_v0  ;;  %v1747_v58 = vld [vmem:[%s4736_s4] sm:$0xff] }
 0x236   :  { %598 = vmatprep.subr.bf16.mxu0 %v4086_v61  ;;  %v4204_v24 = vpop.permute.xlu0 %807  ;;  %1750 = vperm.xlu0 %3796, %v1747_v58  }
 0x237   :  { %v815_v61 = vsel %vm811_vm5, %v4196_v20, %v4204_v24  ;;  %v816_v14 = vsel %vm811_vm5, %v4204_v24, %v4200_v23  ;;  %v4337_v20 = vld [vmem:[#allocation7 + $0x20] sm:$0xf] }
 0x239   :  { %v4206_v25 = vpop.permute.xlu1 %961 }
 0x23a   :  { %v4208_v26 = vpop.permute.xlu0 %959 }
 0x23b   :  { %v971_v15 = vsel %vm969_vm0, %v4208_v26, %v4206_v25 }
 0x23c   :  { %3469 = vmatmul.mubr.msk.bf16.vlgmr.msra.gmra.mrb[12].mxu0 %vm386_vm14, %v347_v21 }
 0x23d   :  { %599 = vmatpush1.bf16.msra.mxu0 %v4090_v62  ;;  %v4212_v27 = vpop.permute.xlu1 %963  ;;  %630 = vmatprep.mubr.bf16.mxu0 %v3903_v0 }
 0x23e   :  { %668 = vmatprep.subr.bf16.mxu0 %v655_v28  ;;  %v4216_v29 = vpop.permute.xlu0 %957  ;;  %v972_v22 = vsel %vm969_vm0, %v4206_v25, %v4212_v27  ;;  %v1114_v25 = vld [vmem:[#allocation7 + $0x14] sm:$0xf] }
 0x23f   :  { %v970_v18 = vsel %vm969_vm0, %v4216_v29, %v4208_v26 }
 0x241   :  { %v4218_v30 = vpop.permute.xlu1 %967 }
 0x242   :  { %v4220_v31 = vpop.permute.xlu0 %965 }
 0x243   :  { %v4225_v32 = vsel %vm969_vm0, %v4220_v31, %v4218_v30  ;;  %v973_v19 = vsel %vm969_vm0, %v4212_v27, %v4220_v31  ;;  %v1272_v27 = vld [vmem:[#allocation7 + $0x18] sm:$0xf] }
 0x244   :  { %3470 = vmatmul.mubr.msk.bf16.vlgmr.msra.gmra.mrb[16].mxu0 %vm386_vm14, %v347_v21  ;;  %v956_v21 = vld [vmem:[#allocation7 + $0x10] sm:$0xf] }
 0x245   :  { %669 = vmatpush1.bf16.msra.mxu0 %v654_v33  ;;  %v4229_v34 = vpop.permute.xlu1 %1119  ;;  %700 = vmatprep.mubr.bf16.mxu0 %v3903_v0 }
 0x246   :  { %709 = vmatprep.subr.bf16.mxu0 %v657_v35  ;;  %v4233_v36 = vpop.permute.xlu0 %1117 }
 0x249   :  { %v4235_v37 = vpop.permute.xlu1 %1121 }
 0x24a   :  { %v4240_v39 = vsel %vm1127_vm1, %v4229_v34, %v4235_v37  ;;  %v1116_v40 = vpop.permute.xlu0 %1115 }
 0x24b   :  { %v4244_v41 = vsel %vm1127_vm1, %v1116_v40, %v4233_v36  ;;  %v1778_v40 = vlaneseq }
 0x24c   :  { %3471 = vmatmul.mubr.msk.bf16.vlgmr.msra.gmra.mrb[8].mxu0 %vm386_vm14, %v640_v38 }
 0x24d   :  { %710 = vmatpush1.bf16.msra.mxu0 %v656_v42  ;;  %v4248_v43 = vpop.permute.xlu1 %1125  ;;  %741 = vmatprep.mubr.bf16.mxu0 %v3903_v0  ;;  %v1779_v42 = vshrl.u32 %v1778_v40, 7 }
 0x24e   :  { %750 = vmatprep.subr.bf16.mxu0 %v652_v16  ;;  %v4251_v44 = vpop.permute.xlu0 %1123 }
 0x24f   :  { %v1131_v24 = vsel %vm1127_vm1, %v4235_v37, %v4251_v44  ;;  %v1132_v26 = vsel %vm1127_vm1, %v4251_v44, %v4248_v43 }
 0x251   :  { %v1278_v45 = vpop.permute.xlu1 %1277 }
 0x252   :  { %v1276_v46 = vpop.permute.xlu0 %1275 }
 0x253   :  { %v4254_v47 = vsel %vm1285_vm3, %v1276_v46, %v1278_v45 }
 0x254   :  { %3472 = vmatmul.mubr.msk.bf16.vlgmr.msra.gmra.mrb[12].mxu0 %vm386_vm14, %v640_v38 }
 0x255   :  { %751 = vmatpush1.bf16.msra.mxu0 %v658_v48  ;;  %v1280_v49 = vpop.permute.xlu1 %1279  ;;  %782 = vmatprep.mubr.bf16.mxu0 %v3903_v0 }
 0x256   :  { %v4263_v51 = vsel %vm1285_vm3, %v1278_v45, %v1280_v49  ;;  %826 = vmatprep.subr.bf16.mxu0 %v813_v50  ;;  %v1274_v52 = vpop.permute.xlu0 %1273  ;;  %v1792_v45 = vsub.s32 3, %v1779_v42 }
 0x257   :  { %v4266_v53 = vsel %vm1285_vm3, %v1274_v52, %v1276_v46 }
 0x259   :  { %v4268_v54 = vpop.permute.xlu1 %1283 }
 0x25a   :  { %v4270_v55 = vpop.permute.xlu0 %1281 }
 0x25b   :  { %v4274_v56 = vsel %vm1285_vm3, %v1280_v49, %v4270_v55  ;;  %v1290_v28 = vsel %vm1285_vm3, %v4270_v55, %v4268_v54 }
 0x25c   :  { %3473 = vmatmul.mubr.msk.bf16.vlgmr.msra.gmra.mrb[16].mxu0 %vm386_vm14, %v640_v38 }
 0x25d   :  { %827 = vmatpush1.bf16.msra.mxu0 %v812_v57  ;;  %v1436_v60 = vpop.permute.xlu1 %1435  ;;  %858 = vmatprep.mubr.bf16.mxu0 %v3903_v0 }
 0x25e   :  { %867 = vmatprep.subr.bf16.mxu0 %v815_v61  ;;  %v1434_v62 = vpop.permute.xlu0 %1433 }
 0x25f   :  { %v4290_v63 = vsel %vm1443_vm6, %v1434_v62, %v1436_v60 }
 0x261   :  { %v1438_v1 = vpop.permute.xlu1 %1437 }
 0x262   :  { %v1432_v3 = vpop.permute.xlu0 %1431  ;;  %v1446_v9 = vsel %vm1443_vm6, %v1436_v60, %v1438_v1 }
 0x263   :  { %v4293_v4 = vsel %vm1443_vm6, %v1432_v3, %v1434_v62  ;;  %v1784_v3 = vsub.s32 1, %v1779_v42 }
 0x264   :  { %3474 = vmatmul.mubr.msk.bf16.vlgmr.msra.gmra.mrb[8].mxu0 %vm386_vm14, %v798_v2 }
 0x265   :  { %868 = vmatpush1.bf16.msra.mxu0 %v814_v5  ;;  %v4299_v6 = vpop.permute.xlu1 %1441  ;;  %899 = vmatprep.mubr.bf16.mxu0 %v3903_v0 }
 0x266   :  { %908 = vmatprep.subr.bf16.mxu0 %v4200_v23  ;;  %v4303_v7 = vpop.permute.xlu0 %1439  ;;  %v1129_v23 = vsel %vm1127_vm1, %v4233_v36, %v4229_v34 }
 0x267   :  { %v1447_v8 = vsel %vm1443_vm6, %v1438_v1, %v4303_v7 }
 0x268   :  { %1499 = vmatprep.subr.bf16.mxu1 %v1447_v8 }
 0x269   :  { %v4308_v10 = vpop.permute.xlu1 %1597  ;;  %1500 = vmatpush1.bf16.msra.mxu1 %v1446_v9 }
 0x26a   :  { %v1596_v11 = vpop.permute.xlu0 %1595 }
 0x26b   :  { %v1605_v13 = vsel %vm1601_vm7, %v1596_v11, %v4308_v10 }
 0x26c   :  { %3475 = vmatmul.mubr.msk.bf16.vlgmr.msra.gmra.mrb[12].mxu0 %vm386_vm14, %v798_v2  ;;  %1657 = vmatprep.subr.bf16.mxu1 %v1605_v13 }
 0x26d   :  { %909 = vmatpush1.bf16.msra.mxu0 %v816_v14  ;;  %3487 = vmatmul.mubr.msk.bf16.vlgmr.msra.gmra.mrb[0].mxu1 %vm386_vm14, %v4310_v12  ;;  %v1592_v29 = vpop.permute.xlu1 %1591  ;;  %v1796_v14 = vsub.s32 4, %v1779_v42 }
 0x26e   :  { %984 = vmatprep.subr.bf16.mxu0 %v971_v15  ;;  %v4323_v16 = vpop.permute.xlu0 %1593  ;;  %940 = vmatprep.mubr.bf16.mxu0 %v3903_v0 }
 0x26f   :  { %v1604_v17 = vsel %vm1601_vm7, %v4323_v16, %v1596_v11  ;;  %1689 = vmatprep.mubr.bf16.mxu1 %v3903_v0  ;;  %v1603_v31 = vsel %vm1601_vm7, %v1592_v29, %v4323_v16  ;;  %v1800_v16 = vsub.s32 5, %v1779_v42 }
 0x270   :  { %1658 = vmatpush1.bf16.msra.mxu1 %v1604_v17 }
 0x271   :  { %v1600_v34 = vpop.permute.xlu1 %1599 }
 0x272   :  { %v1606_v35 = vsel %vm1601_vm7, %v4308_v10, %v1600_v34 }
 0x274   :  { %3476 = vmatmul.mubr.msk.bf16.vlgmr.msra.gmra.mrb[16].mxu0 %vm386_vm14, %v798_v2  ;;  %v1780_v2 = vsub.s32 0, %v1779_v42 }
 0x275   :  { %985 = vmatpush1.bf16.msra.mxu0 %v970_v18  ;;  %1016 = vmatprep.mubr.bf16.mxu0 %v3903_v0 }
 0x276   :  { %1025 = vmatprep.subr.bf16.mxu0 %v973_v19 }
 0x279   :  { %3490 = vmatmul.mubr.msk.bf16.vlgmr.msra.gmra.mrb[0].mxu1 %vm386_vm14, %v4337_v20 }
 0x27a   :  { %1952 = vmatprep.mubr.bf16.mxu1 %v3903_v0 }
 0x27c   :  { %3477 = vmatmul.mubr.msk.bf16.vlgmr.msra.gmra.mrb[8].mxu0 %vm386_vm14, %v956_v21 }
 0x27d   :  { %1026 = vmatpush1.bf16.msra.mxu0 %v972_v22  ;;  %1057 = vmatprep.mubr.bf16.mxu0 %v3903_v0 }
 0x27e   :  { %1066 = vmatprep.subr.bf16.mxu0 %v4218_v30  ;;  %v1448_v30 = vsel %vm1443_vm6, %v4303_v7, %v4299_v6 }
 0x282   :  { %v1763_v52 = vpop.permute.xlu1 %1762 }
 0x284   :  { %3478 = vmatmul.mubr.msk.bf16.vlgmr.msra.gmra.mrb[12].mxu0 %vm386_vm14, %v956_v21 }
 0x285   :  { %1067 = vmatpush1.bf16.msra.mxu0 %v4225_v32  ;;  %1098 = vmatprep.mubr.bf16.mxu0 %v3903_v0  ;;  %v1590_v32 = vpop.permute.xlu0 %1589 }
 0x286   :  { %1142 = vmatprep.subr.bf16.mxu0 %v1129_v23  ;;  %v1602_v33 = vsel %vm1601_vm7, %v1590_v32, %v1592_v29 }
 0x28c   :  { %3479 = vmatmul.mubr.msk.bf16.vlgmr.msra.gmra.mrb[16].mxu0 %vm386_vm14, %v956_v21 }
 0x28d   :  { %1143 = vmatpush1.bf16.msra.mxu0 %v4244_v41  ;;  %1174 = vmatprep.mubr.bf16.mxu0 %v3903_v0  ;;  %v1745_v41 = vld [vmem:[%s4741_s9] sm:$0x3f] }
 0x28e   :  { %1183 = vmatprep.subr.bf16.mxu0 %v1131_v24  ;;  %vm1746_vm8 = vcmp.gt.f32.partialorder %v1745_v41, 0.5 }
 0x28f   :  { %v1777_v44 = vsel %vm1746_vm8, 1, %v3903_v0 }
 0x290   :  { %v1781_v5 = vrot.slane %v1777_v44, %v1780_v2  ;;  %v1785_v8 = vrot.slane %v1777_v44, %v1784_v3  ;;  %v1797_v21 = vrot.slane %v1777_v44, %v1796_v14 }
 0x292   :  { %vm1803_vm8 = vcmp.eq.s32.totalorder %v1785_v8, 1 }
 0x294   :  { %3480 = vmatmul.mubr.msk.bf16.vlgmr.msra.gmra.mrb[8].mxu0 %vm386_vm14, %v1114_v25 }
 0x295   :  { %1184 = vmatpush1.bf16.msra.mxu0 %v4240_v39  ;;  %1215 = vmatprep.mubr.bf16.mxu0 %v3903_v0 }
 0x296   :  { %1224 = vmatprep.subr.bf16.mxu0 %v4248_v43  ;;  %v1788_v43 = vsub.s32 2, %v1779_v42 }
 0x29c   :  { %3481 = vmatmul.mubr.msk.bf16.vlgmr.msra.gmra.mrb[12].mxu0 %vm386_vm14, %v1114_v25 }
 0x29d   :  { %1225 = vmatpush1.bf16.msra.mxu0 %v1132_v26  ;;  %1256 = vmatprep.mubr.bf16.mxu0 %v3903_v0 }
 0x29e   :  { %1300 = vmatprep.subr.bf16.mxu0 %v4254_v47 }
 0x2a4   :  { %3482 = vmatmul.mubr.msk.bf16.vlgmr.msra.gmra.mrb[16].mxu0 %vm386_vm14, %v1114_v25  ;;  %v1801_v25 = vrot.slane %v1777_v44, %v1800_v16 }
 0x2a5   :  { %1301 = vmatpush1.bf16.msra.mxu0 %v4266_v53  ;;  %1332 = vmatprep.mubr.bf16.mxu0 %v3903_v0  ;;  %v1789_v53 = vrot.slane %v1777_v44, %v1788_v43 }
 0x2a6   :  { %1341 = vmatprep.subr.bf16.mxu0 %v4274_v56  ;;  %v1793_v56 = vrot.slane %v1777_v44, %v1792_v45 }
 0x2a7   :  { %vm1804_vm10 = vcmp.eq.s32.totalorder %v1789_v53, 1 }
 0x2a8   :  { %vm1805_vm11 = vcmp.eq.s32.totalorder %v1793_v56, 1  ;;  %v3370_v56 = vld [vmem:[%s4739_s7] sm:$0xff] }
 0x2ac   :  { %3483 = vmatmul.mubr.msk.bf16.vlgmr.msra.gmra.mrb[8].mxu0 %vm386_vm14, %v1272_v27 }
 0x2ad   :  { %1342 = vmatpush1.bf16.msra.mxu0 %v4263_v51  ;;  %1373 = vmatprep.mubr.bf16.mxu0 %v3903_v0 }
 0x2ae   :  { %1382 = vmatprep.subr.bf16.mxu0 %v4268_v54 }
 0x2b4   :  { %3484 = vmatmul.mubr.msk.bf16.vlgmr.msra.gmra.mrb[12].mxu0 %vm386_vm14, %v1272_v27 }
 0x2b5   :  { %1383 = vmatpush1.bf16.msra.mxu0 %v1290_v28  ;;  %1414 = vmatprep.mubr.bf16.mxu0 %v3903_v0  ;;  %v1751_v47 = vpop.permute.xlu0 %1750 }
 0x2b6   :  { %1458 = vmatprep.subr.bf16.mxu0 %v4290_v63 }
 0x2bc   :  { %3485 = vmatmul.mubr.msk.bf16.vlgmr.msra.gmra.mrb[16].mxu0 %vm386_vm14, %v1272_v27 }
 0x2bd   :  { %1459 = vmatpush1.bf16.msra.mxu0 %v4293_v4  ;;  %1490 = vmatprep.mubr.bf16.mxu0 %v3903_v0 }
 0x2be   :  { %1540 = vmatprep.subr.bf16.mxu0 %v4299_v6 }
 0x2c4   :  { %3486 = vmatmul.mubr.msk.bf16.vlgmr.msra.gmra.mrb[8].mxu0 %vm386_vm14, %v4310_v12 }
 0x2c5   :  { %1541 = vmatpush1.bf16.msra.mxu0 %v1448_v30  ;;  %1572 = vmatprep.mubr.bf16.mxu0 %v3903_v0 }
 0x2c6   :  { %1616 = vmatprep.subr.bf16.mxu0 %v1603_v31 }
 0x2cc   :  { %3488 = vmatmul.mubr.msk.bf16.vlgmr.msra.gmra.mrb[16].mxu0 %vm386_vm14, %v4310_v12 }
 0x2cd   :  { %1617 = vmatpush1.bf16.msra.mxu0 %v1602_v33  ;;  %1648 = vmatprep.mubr.bf16.mxu0 %v3903_v0 }
 0x2ce   :  { %1698 = vmatprep.subr.bf16.mxu0 %v1600_v34 }
 0x2d4   :  { %3489 = vmatmul.mubr.msk.bf16.vlgmr.msra.gmra.mrb[8].mxu0 %vm386_vm14, %v4337_v20 }
 0x2d5   :  { %1699 = vmatpush1.bf16.msra.mxu0 %v1606_v35  ;;  %1730 = vmatprep.mubr.bf16.mxu0 %v3903_v0 }
 0x2dc   :  { %3491 = vmatmul.mubr.msk.bf16.vlgmr.msra.gmra.mrb[16].mxu0 %vm386_vm14, %v4337_v20  ;;  %vm1802_vm14 = vcmp.eq.s32.totalorder %v1781_v5, 1 }
 0x34c   :  { %v1691_v36 = vpop.f32.mrb[0].mxu1 }
 0x34d   :  { %v1693_v37 = vpop.f32.mrb[1].mxu1 }
 0x34e   :  { %v1695_v38 = vpop.f32.mrb[2].mxu1 }
 0x34f   :  { %v1696_v39 = vpop.f32.mrb[3].mxu1 }
 0x387   :  { %v1375_v46 = vpop.f32.mrb[12].mxu0 }
 0x388   :  { %v3583_v48 = vadd.f32 %v1691_v36, %v1375_v46  ;;  %v1377_v49 = vpop.f32.mrb[13].mxu0 }
 0x389   :  { %v3584_v50 = vadd.f32 %v1693_v37, %v1377_v49  ;;  %v1379_v51 = vpop.f32.mrb[14].mxu0 }
 0x38a   :  { %v1380_v54 = vpop.f32.mrb[15].mxu0  ;;  %v1755_v55 = vmul.f32 %v3583_v48, %v1751_v47 }
 0x38b   :  { %v1756_v57 = vmul.f32 %v3584_v50, %v1751_v47 }
 0x38c   :  { %v1767_v58 = vadd.f32 %v1763_v52, %v1755_v55  ;;  %v3382_v55 = vld [vmem:[%s4740_s8] sm:$0xff] }
 0x38d   :  { %v1768_v59 = vadd.f32 %v1763_v52, %v1756_v57 }
 0x38e   :  { %v1773_v60 = vmax.f32 %v1767_v58, 0.0 }
 0x38f   :  { %v1774_v61 = vmax.f32 %v1768_v59, 0.0 }
 0x390   :  { %v1810_v62 = vsel %vm1804_vm10, %v1773_v60, 0.0  ;;  %vm1806_vm10 = vcmp.eq.s32.totalorder %v1797_v21, 1 }
 0x391   :  { %v1811_v63 = vsel %vm1805_vm11, %v1774_v61, 0.0  ;;  %vm1807_vm11 = vcmp.eq.s32.totalorder %v1801_v25, 1 }
 0x392   :  { %v3564_v1 = vpack.c.bf16 %v1811_v63, %v1810_v62 }
 0x394   :  { %1837 = vrot.lane.b32.xlu0 %v3564_v1, %s3904_s16  ;;  %v3495_v1 = vld [vmem:[%s4738_s6 + $0x4] sm:$0xf] }
 0x3a7   :  { %v1650_v4 = vpop.f32.mrb[8].mxu0 }
 0x3a8   :  { %v1753_v6 = vmul.f32 %v1751_v47, %v1650_v4  ;;  %v1652_v7 = vpop.f32.mrb[9].mxu0 }
 0x3a9   :  { %v1754_v9 = vmul.f32 %v1751_v47, %v1652_v7  ;;  %v1654_v10 = vpop.f32.mrb[10].mxu0 }
 0x3aa   :  { %v1765_v11 = vadd.f32 %v1763_v52, %v1753_v6  ;;  %v1655_v12 = vpop.f32.mrb[11].mxu0  ;;  %v1860_v10 = vld [vmem:[%s4738_s6] sm:$0xf] }
 0x3ab   :  { %v1766_v13 = vadd.f32 %v1763_v52, %v1754_v9 }
 0x3ac   :  { %v1771_v15 = vmax.f32 %v1765_v11, 0.0 }
 0x3ad   :  { %v1772_v17 = vmax.f32 %v1766_v13, 0.0 }
 0x3ae   :  { %v1808_v18 = vsel %vm1802_vm14, %v1771_v15, 0.0  ;;  %vm1853_vm14 = vcmask 1047556  }
 0x3af   :  { %v1732_v19 = vpop.f32.mrb[16].mxu0  ;;  %v1809_v20 = vsel %vm1803_vm8, %v1772_v17, 0.0  ;;  %vm1845_vm8 = vcmask 1043456   ;;  %vm1854_vm9 = vmor %vm1853_vm14, %vm273_vm4  ;;  %vm3402_vm4 = vcmask 556032  }
 0x3b0   :  { %v1757_v22 = vmul.f32 %v1751_v47, %v1732_v19  ;;  %v1734_v23 = vpop.f32.mrb[17].mxu0  ;;  %v3563_v24 = vpack.c.bf16 %v1809_v20, %v1808_v18 }
 0x3b1   :  { %v1758_v26 = vmul.f32 %v1751_v47, %v1734_v23  ;;  %v1736_v27 = vpop.f32.mrb[18].mxu0  ;;  %v3514_v23 = vld [vmem:[%s4738_s6 + $0x8] sm:$0xf] }
 0x3b2   :  { %v1769_v28 = vadd.f32 %v1763_v52, %v1757_v22  ;;  %v1737_v29 = vpop.f32.mrb[19].mxu0  ;;  %1835 = vrot.lane.b32.xlu1 %v3563_v24, %s3904_s16 }
 0x3b3   :  { %v1770_v30 = vadd.f32 %v1763_v52, %v1758_v26 }
 0x3b4   :  { %v1775_v31 = vmax.f32 %v1769_v28, 0.0 }
 0x3b5   :  { %v1776_v32 = vmax.f32 %v1770_v30, 0.0 }
 0x3b6   :  { %v1812_v33 = vsel %vm1806_vm10, %v1775_v31, 0.0  ;;  %vm1858_vm10 = vmor %vm345_vm12, %vm1845_vm8  ;;  %vm3416_vm12 = vcmask 490496  }
 0x3b7   :  { %v1813_v34 = vsel %vm1807_vm11, %v1776_v32, 0.0 }
 0x3b8   :  { %v3565_v35 = vpack.c.bf16 %v1813_v34, %v1812_v33 }
 0x3ba   :  { %1839 = vrot.lane.b32.xlu1 %v3565_v35, %s3904_s16 }
 0x406   :  { %v1838_v36 = vpop.permute.xlu0 %1837 }
 0x407   :  { %v1842_v38 = vrot.slane %v1838_v36, 4 }
 0x424   :  { %v1836_v37 = vpop.permute.xlu1 %1835 }
 0x425   :  { %v1841_v39 = vrot.slane %v1836_v37, 4 }
 0x427   :  { %v1844_v40 = vsel %vm65_vm2, %v1841_v39, %v1836_v37  ;;  %v1846_v41 = vsel %vm1845_vm8, %v1841_v39, %v1842_v38 }
 0x428   :  { %v1847_v42 = vsel %vm65_vm2, %v1846_v41, %v1838_v36  ;;  %1855 = vst.msk [vmem:[#allocation3] sm:$0xff] %vm1854_vm9, %v1844_v40 }
 0x429   :  { %v4432_v50 = vcombine.high %v1847_v42, %v1847_v42  ;;  %v4434_v51 = vcombine.low %v1847_v42, %v1847_v42 }
 0x42b   :  { %v2053_v12 = vsel %vm1845_vm8, %v4434_v51, 0 }
 0x42c   :  { %v1840_v43 = vpop.permute.xlu1 %1839 }
 0x42d   :  { %v1843_v44 = vrot.slane %v1840_v43, 4 }
 0x42f   :  { %v1861_v45 = vld [vmem:[#allocation3] sm:$0xff]  ;;  %v1848_v46 = vsel %vm1845_vm8, %v1842_v38, %v1843_v44  ;;  %v3521_v38 = vld [vmem:[%s4738_s6 + $0xc] sm:$0xf] }
 0x430   :  { %v4423_v47 = vcombine.low %v1861_v45, %v1861_v45  ;;  %v4425_v48 = vcombine.high %v1861_v45, %v1861_v45  ;;  %v1849_v49 = vsel %vm65_vm2, %v1848_v46, %v1840_v43  ;;  %vm1898_vm2 = vcmask 64512  }
 0x431   :  { %1859 = vst.msk [vmem:[#allocation3 + $0x10] sm:$0xff] %vm1858_vm10, %v1849_v49 }
 0x432   :  { %1883 = vrot.lane.b32.xlu1 %v4425_v48, %s3908_s2  ;;  %1881 = vrot.lane.b32.xlu0 %v4423_v47, %s3908_s2  ;;  %v2047_v9 = vsel %vm1845_vm8, %v4423_v47, 0 }
 0x436   :  { %1887 = vrot.lane.b32.xlu1 %v4432_v50, %s3908_s2  ;;  %1885 = vrot.lane.b32.xlu0 %v4434_v51, %s3908_s2 }
 0x438   :  { %v1863_v52 = vld [vmem:[#allocation3 + $0x10] sm:$0xff] }
 0x439   :  { %v4440_v53 = vcombine.low %v1863_v52, %v1863_v52  ;;  %v4442_v54 = vcombine.high %v1863_v52, %v1863_v52 }
 0x43b   :  { %1891 = vrot.lane.b32.xlu1 %v4442_v54, %s3908_s2  ;;  %1889 = vrot.lane.b32.xlu0 %v4440_v53, %s3908_s2  ;;  %v2059_v15 = vsel %vm1845_vm8, %v4440_v53, 0 }
 0x43f   :  { %2191 = vrot.lane.b32.xlu1 %v4425_v48, %s3909_s24  ;;  %2189 = vrot.lane.b32.xlu0 %v4423_v47, %s3909_s24 }
 0x443   :  { %2195 = vrot.lane.b32.xlu1 %v4432_v50, %s3909_s24  ;;  %2193 = vrot.lane.b32.xlu0 %v4434_v51, %s3909_s24 }
 0x447   :  { %2199 = vrot.lane.b32.xlu1 %v4442_v54, %s3909_s24  ;;  %2197 = vrot.lane.b32.xlu0 %v4440_v53, %s3909_s24 }
 0x44b   :  { %2360 = vrot.lane.b32.xlu1 %v4425_v48, %s3910_s25  ;;  %2358 = vrot.lane.b32.xlu0 %v4423_v47, %s3910_s25 }
 0x44f   :  { %2364 = vrot.lane.b32.xlu1 %v4432_v50, %s3910_s25  ;;  %2362 = vrot.lane.b32.xlu0 %v4434_v51, %s3910_s25 }
 0x453   :  { %2368 = vrot.lane.b32.xlu1 %v4442_v54, %s3910_s25  ;;  %2366 = vrot.lane.b32.xlu0 %v4440_v53, %s3910_s25 }
 0x457   :  { %2529 = vrot.lane.b32.xlu1 %v4425_v48, %s3911_s26  ;;  %2527 = vrot.lane.b32.xlu0 %v4423_v47, %s3911_s26 }
 0x45b   :  { %2533 = vrot.lane.b32.xlu1 %v4432_v50, %s3911_s26  ;;  %2531 = vrot.lane.b32.xlu0 %v4434_v51, %s3911_s26 }
 0x45f   :  { %2537 = vrot.lane.b32.xlu1 %v4442_v54, %s3911_s26  ;;  %2535 = vrot.lane.b32.xlu0 %v4440_v53, %s3911_s26 }
 0x463   :  { %2698 = vrot.lane.b32.xlu1 %v4425_v48, %s3912_s27  ;;  %2696 = vrot.lane.b32.xlu0 %v4423_v47, %s3912_s27 }
 0x467   :  { %2702 = vrot.lane.b32.xlu1 %v4432_v50, %s3912_s27  ;;  %2700 = vrot.lane.b32.xlu0 %v4434_v51, %s3912_s27 }
 0x46b   :  { %2706 = vrot.lane.b32.xlu1 %v4442_v54, %s3912_s27  ;;  %2704 = vrot.lane.b32.xlu0 %v4440_v53, %s3912_s27 }
 0x46f   :  { %2867 = vrot.lane.b32.xlu1 %v4425_v48, %s3913_s28  ;;  %2865 = vrot.lane.b32.xlu0 %v4423_v47, %s3913_s28 }
 0x473   :  { %2871 = vrot.lane.b32.xlu1 %v4432_v50, %s3913_s28  ;;  %2869 = vrot.lane.b32.xlu0 %v4434_v51, %s3913_s28 }
 0x477   :  { %2875 = vrot.lane.b32.xlu1 %v4442_v54, %s3913_s28  ;;  %2873 = vrot.lane.b32.xlu0 %v4440_v53, %s3913_s28 }
 0x47b   :  { %3036 = vrot.lane.b32.xlu1 %v4425_v48, %s3914_s29  ;;  %3034 = vrot.lane.b32.xlu0 %v4423_v47, %s3914_s29 }
 0x47f   :  { %3040 = vrot.lane.b32.xlu1 %v4432_v50, %s3914_s29  ;;  %3038 = vrot.lane.b32.xlu0 %v4434_v51, %s3914_s29 }
 0x483   :  { %3044 = vrot.lane.b32.xlu1 %v4442_v54, %s3914_s29  ;;  %3042 = vrot.lane.b32.xlu0 %v4440_v53, %s3914_s29 }
 0x487   :  { %3205 = vrot.lane.b32.xlu1 %v4425_v48, %s3915_s30  ;;  %3203 = vrot.lane.b32.xlu0 %v4423_v47, %s3915_s30 }
 0x48b   :  { %3209 = vrot.lane.b32.xlu1 %v4432_v50, %s3915_s30  ;;  %3207 = vrot.lane.b32.xlu0 %v4434_v51, %s3915_s30 }
 0x48f   :  { %3213 = vrot.lane.b32.xlu1 %v4442_v54, %s3915_s30  ;;  %3211 = vrot.lane.b32.xlu0 %v4440_v53, %s3915_s30  ;;  %v3528_v53 = vld [vmem:[%s4738_s6 + $0x10] sm:$0xf]  ;;  %s3917_s30 = smov [#allocation9]  }
 0x490   :  { %s3431_s11 = sshll.u32 %s3917_s30, 4  ;;  %s3432_s11 = int_to_ptr.vmem [resolvable:$true] %s3431_s11 }
 0x491   :  { %s3869_s12 = scalar_lea.vmem %s3432_s11, 768  ;;  %p3874_p3 = scmp.lt.s32.totalorder %s3432_s11, %s3432_s11 }
 0x492   :  { %p3870_p2 = scmp.ne.s32.totalorder %s3432_s11, %s3869_s12  ;;  %p3875_p4 = scmp.lt.s32.totalorder %s3869_s12, %s3869_s12 }
 0x493   :  { %3385 = vperm.xlu1 %3797, %v3382_v55   ;;  %3373 = vperm.xlu0 %3796, %v3370_v56  }
 0x494   :  { %p3876_p5 = por %p3875_p4, %p3874_p3 }
 0x496   :  { %p3877_p6 = pnand %p3876_p5, %p3870_p2 }
 0x4a4   :  { %v1882_v57 = vpop.permute.xlu0 %1881  ;;  %v1884_v58 = vpop.permute.xlu1 %1883 }
 0x4a5   :  { %v1893_v59 = vsel %vm374_vm13, %v1882_v57, %v1884_v58 }
 0x4a6   :  { %v1903_v63 = vsel %vm1845_vm8, %v1893_v59, 0 }
 0x4a8   :  { %v1886_v60 = vpop.permute.xlu0 %1885  ;;  %v1888_v62 = vpop.permute.xlu1 %1887 }
 0x4a9   :  { %v1894_v61 = vsel %vm374_vm13, %v1884_v58, %v1886_v60  ;;  %v1895_v2 = vsel %vm374_vm13, %v1886_v60, %v1888_v62 }
 0x4aa   :  { %3502 = vmatprep.subr.msk.bf16.mxu1 %vm1845_vm8, %v1894_v61  ;;  %v1909_v5 = vsel %vm1845_vm8, %v1895_v2, 0 }
 0x4ab   :  { %1921 = vmatpush1.bf16.msra.mxu1 %v1903_v63 }
 0x4ad   :  { %v1890_v3 = vpop.permute.xlu0 %1889  ;;  %v1892_v6 = vpop.permute.xlu1 %1891 }
 0x4ae   :  { %v1896_v4 = vsel %vm374_vm13, %v1888_v62, %v1890_v3  ;;  %3503 = vmatmul.mubr.msk.bf16.vlgmr.msra.gmra.mrb[4].mxu1 %vm1898_vm2, %v3495_v1  ;;  %v1897_v7 = vsel %vm374_vm13, %v1890_v3, %v1892_v6 }
 0x4af   :  { %3504 = vmatprep.subr.msk.bf16.mxu1 %vm1845_vm8, %v1896_v4  ;;  %1993 = vmatprep.mubr.bf16.mxu1 %v3903_v0  ;;  %v1915_v8 = vsel %vm1845_vm8, %v1897_v7, 0 }
 0x4b0   :  { %1962 = vmatpush1.bf16.msra.mxu1 %v1909_v5  ;;  %v3535_v5 = vld [vmem:[%s4738_s6 + $0x14] sm:$0xf] }
 0x4b1   :  { %3506 = vmatprep.subr.msk.bf16.mxu1 %vm1845_vm8, %v1892_v6  ;;  %v2190_v11 = vpop.permute.xlu0 %2189  ;;  %v2192_v14 = vpop.permute.xlu1 %2191 }
 0x4b2   :  { %v2201_v17 = vsel %vm653_vm15, %v2190_v11, %v2192_v14 }
 0x4b3   :  { %v2210_v19 = vsel %vm1845_vm8, %v2201_v17, 0 }
 0x4b5   :  { %v2194_v13 = vpop.permute.xlu0 %2193  ;;  %v2196_v20 = vpop.permute.xlu1 %2195 }
 0x4b6   :  { %3505 = vmatmul.mubr.msk.bf16.vlgmr.msra.gmra.mrb[8].mxu1 %vm1898_vm2, %v3495_v1  ;;  %v2202_v16 = vsel %vm653_vm15, %v2192_v14, %v2194_v13  ;;  %v2203_v22 = vsel %vm653_vm15, %v2194_v13, %v2196_v20 }
 0x4b7   :  { %2003 = vmatpush1.bf16.msra.mxu1 %v1915_v8  ;;  %2034 = vmatprep.mubr.bf16.mxu1 %v3903_v0  ;;  %v2216_v24 = vsel %vm1845_vm8, %v2203_v22, 0 }
 0x4b8   :  { %3508 = vmatprep.subr.msk.bf16.mxu1 %vm1845_vm8, %v4425_v48 }
 0x4b9   :  { %v2198_v18 = vpop.permute.xlu0 %2197  ;;  %v2200_v26 = vpop.permute.xlu1 %2199 }
 0x4ba   :  { %v2204_v21 = vsel %vm653_vm15, %v2196_v20, %v2198_v18  ;;  %v2205_v27 = vsel %vm653_vm15, %v2198_v18, %v2200_v26  ;;  %v3542_v20 = vld [vmem:[%s4738_s6 + $0x18] sm:$0xf] }
 0x4bb   :  { %v2222_v29 = vsel %vm1845_vm8, %v2205_v27, 0 }
 0x4bd   :  { %v2359_v25 = vpop.permute.xlu0 %2358  ;;  %v2361_v30 = vpop.permute.xlu1 %2360 }
 0x4be   :  { %3507 = vmatmul.mubr.msk.bf16.vlgmr.msra.gmra.mrb[12].mxu1 %vm1898_vm2, %v3495_v1  ;;  %v2370_v32 = vsel %vm811_vm5, %v2359_v25, %v2361_v30 }
 0x4bf   :  { %2065 = vmatpush1.bf16.msra.mxu1 %v2047_v9  ;;  %2096 = vmatprep.mubr.bf16.mxu1 %v3903_v0  ;;  %v2379_v34 = vsel %vm1845_vm8, %v2370_v32, 0 }
 0x4c0   :  { %3510 = vmatprep.subr.msk.bf16.mxu1 %vm1845_vm8, %v4432_v50 }
 0x4c1   :  { %v2363_v28 = vpop.permute.xlu0 %2362  ;;  %v2365_v35 = vpop.permute.xlu1 %2364 }
 0x4c2   :  { %v2371_v31 = vsel %vm811_vm5, %v2361_v30, %v2363_v28  ;;  %v2372_v37 = vsel %vm811_vm5, %v2363_v28, %v2365_v35 }
 0x4c3   :  { %v2385_v39 = vsel %vm1845_vm8, %v2372_v37, 0 }
 0x4c5   :  { %v2367_v33 = vpop.permute.xlu0 %2366  ;;  %v2369_v41 = vpop.permute.xlu1 %2368 }
 0x4c6   :  { %3509 = vmatmul.mubr.msk.bf16.vlgmr.msra.gmra.mrb[4].mxu1 %vm1898_vm2, %v1860_v10  ;;  %v2373_v36 = vsel %vm811_vm5, %v2365_v35, %v2367_v33  ;;  %v2374_v42 = vsel %vm811_vm5, %v2367_v33, %v2369_v41  ;;  %v3549_v35 = vld [vmem:[%s4738_s6 + $0x1c] sm:$0xf] }
 0x4c7   :  { %2106 = vmatpush1.bf16.msra.mxu1 %v2053_v12  ;;  %2137 = vmatprep.mubr.bf16.mxu1 %v3903_v0  ;;  %v2391_v44 = vsel %vm1845_vm8, %v2374_v42, 0 }
 0x4c8   :  { %3512 = vmatprep.subr.msk.bf16.mxu1 %vm1845_vm8, %v4442_v54 }
 0x4c9   :  { %v2528_v40 = vpop.permute.xlu0 %2527  ;;  %v2530_v45 = vpop.permute.xlu1 %2529 }
 0x4ca   :  { %v2539_v47 = vsel %vm969_vm0, %v2528_v40, %v2530_v45 }
 0x4cb   :  { %v2548_v49 = vsel %vm1845_vm8, %v2539_v47, 0 }
 0x4cd   :  { %v2532_v43 = vpop.permute.xlu0 %2531  ;;  %v2534_v50 = vpop.permute.xlu1 %2533 }
 0x4ce   :  { %3511 = vmatmul.mubr.msk.bf16.vlgmr.msra.gmra.mrb[8].mxu1 %vm1898_vm2, %v1860_v10  ;;  %v2540_v46 = vsel %vm969_vm0, %v2530_v45, %v2532_v43  ;;  %v2541_v52 = vsel %vm969_vm0, %v2532_v43, %v2534_v50 }
 0x4cf   :  { %2147 = vmatpush1.bf16.msra.mxu1 %v2059_v15  ;;  %2178 = vmatprep.mubr.bf16.mxu1 %v3903_v0  ;;  %v2554_v54 = vsel %vm1845_vm8, %v2541_v52, 0 }
 0x4d0   :  { %3515 = vmatprep.subr.msk.bf16.mxu1 %vm1845_vm8, %v2202_v16 }
 0x4d1   :  { %v2536_v48 = vpop.permute.xlu0 %2535  ;;  %v2538_v56 = vpop.permute.xlu1 %2537 }
 0x4d2   :  { %v2542_v51 = vsel %vm969_vm0, %v2534_v50, %v2536_v48  ;;  %v2543_v57 = vsel %vm969_vm0, %v2536_v48, %v2538_v56  ;;  %v3556_v50 = vld [vmem:[%s4738_s6 + $0x20] sm:$0xf]  ;;  %s3916_s6 = smov 60  }
 0x4d3   :  { %v2560_v59 = vsel %vm1845_vm8, %v2543_v57, 0 }
 0x4d5   :  { %v2697_v55 = vpop.permute.xlu0 %2696  ;;  %v2699_v60 = vpop.permute.xlu1 %2698 }
 0x4d6   :  { %3513 = vmatmul.mubr.msk.bf16.vlgmr.msra.gmra.mrb[12].mxu1 %vm1898_vm2, %v1860_v10  ;;  %v2708_v62 = vsel %vm1127_vm1, %v2697_v55, %v2699_v60 }
 0x4d7   :  { %2228 = vmatpush1.bf16.msra.mxu1 %v2210_v19  ;;  %2259 = vmatprep.mubr.bf16.mxu1 %v3903_v0  ;;  %v2717_v1 = vsel %vm1845_vm8, %v2708_v62, 0 }
 0x4d8   :  { %3517 = vmatprep.subr.msk.bf16.mxu1 %vm1845_vm8, %v2204_v21 }
 0x4d9   :  { %v2701_v58 = vpop.permute.xlu0 %2700  ;;  %v2703_v2 = vpop.permute.xlu1 %2702 }
 0x4da   :  { %v2709_v61 = vsel %vm1127_vm1, %v2699_v60, %v2701_v58  ;;  %v2710_v4 = vsel %vm1127_vm1, %v2701_v58, %v2703_v2 }
 0x4db   :  { %v2723_v6 = vsel %vm1845_vm8, %v2710_v4, 0 }
 0x4dd   :  { %v2705_v63 = vpop.permute.xlu0 %2704  ;;  %v2707_v8 = vpop.permute.xlu1 %2706 }
 0x4de   :  { %3516 = vmatmul.mubr.msk.bf16.vlgmr.msra.gmra.mrb[4].mxu1 %vm1898_vm2, %v3514_v23  ;;  %v2711_v3 = vsel %vm1127_vm1, %v2703_v2, %v2705_v63  ;;  %v2712_v9 = vsel %vm1127_vm1, %v2705_v63, %v2707_v8 }
 0x4df   :  { %2269 = vmatpush1.bf16.msra.mxu1 %v2216_v24  ;;  %2300 = vmatprep.mubr.bf16.mxu1 %v3903_v0  ;;  %v2729_v11 = vsel %vm1845_vm8, %v2712_v9, 0 }
 0x4e0   :  { %3519 = vmatprep.subr.msk.bf16.mxu1 %vm1845_vm8, %v2200_v26 }
 0x4e1   :  { %v2866_v7 = vpop.permute.xlu0 %2865  ;;  %v2868_v12 = vpop.permute.xlu1 %2867 }
 0x4e2   :  { %v2877_v14 = vsel %vm1285_vm3, %v2866_v7, %v2868_v12 }
 0x4e3   :  { %v2886_v16 = vsel %vm1845_vm8, %v2877_v14, 0 }
 0x4e5   :  { %v2870_v10 = vpop.permute.xlu0 %2869  ;;  %v2872_v17 = vpop.permute.xlu1 %2871 }
 0x4e6   :  { %3518 = vmatmul.mubr.msk.bf16.vlgmr.msra.gmra.mrb[8].mxu1 %vm1898_vm2, %v3514_v23  ;;  %v2878_v13 = vsel %vm1285_vm3, %v2868_v12, %v2870_v10  ;;  %v2879_v19 = vsel %vm1285_vm3, %v2870_v10, %v2872_v17 }
 0x4e7   :  { %2310 = vmatpush1.bf16.msra.mxu1 %v2222_v29  ;;  %2341 = vmatprep.mubr.bf16.mxu1 %v3903_v0  ;;  %v2892_v21 = vsel %vm1845_vm8, %v2879_v19, 0 }
 0x4e8   :  { %3522 = vmatprep.subr.msk.bf16.mxu1 %vm1845_vm8, %v2371_v31 }
 0x4e9   :  { %v2874_v15 = vpop.permute.xlu0 %2873 }
 0x4ea   :  { %v2880_v18 = vsel %vm1285_vm3, %v2872_v17, %v2874_v15 }
 0x4ed   :  { %v3035_v22 = vpop.permute.xlu0 %3034 }
 0x4ee   :  { %3520 = vmatmul.mubr.msk.bf16.vlgmr.msra.gmra.mrb[12].mxu1 %vm1898_vm2, %v3514_v23  ;;  %v2876_v23 = vpop.permute.xlu1 %2875 }
 0x4ef   :  { %2397 = vmatpush1.bf16.msra.mxu1 %v2379_v34  ;;  %2428 = vmatprep.mubr.bf16.mxu1 %v3903_v0  ;;  %v2881_v24 = vsel %vm1285_vm3, %v2874_v15, %v2876_v23 }
 0x4f0   :  { %3524 = vmatprep.subr.msk.bf16.mxu1 %vm1845_vm8, %v2373_v36  ;;  %v2898_v26 = vsel %vm1845_vm8, %v2881_v24, 0 }
 0x4f1   :  { %v3039_v25 = vpop.permute.xlu0 %3038 }
 0x4f2   :  { %v3037_v27 = vpop.permute.xlu1 %3036 }
 0x4f3   :  { %v3047_v28 = vsel %vm1443_vm6, %v3037_v27, %v3039_v25  ;;  %v3046_v29 = vsel %vm1443_vm6, %v3035_v22, %v3037_v27 }
 0x4f4   :  { %v3055_v31 = vsel %vm1845_vm8, %v3046_v29, 0 }
 0x4f5   :  { %v3043_v30 = vpop.permute.xlu0 %3042 }
 0x4f6   :  { %3523 = vmatmul.mubr.msk.bf16.vlgmr.msra.gmra.mrb[4].mxu1 %vm1898_vm2, %v3521_v38  ;;  %v3041_v32 = vpop.permute.xlu1 %3040 }
 0x4f7   :  { %2438 = vmatpush1.bf16.msra.mxu1 %v2385_v39  ;;  %2469 = vmatprep.mubr.bf16.mxu1 %v3903_v0  ;;  %v3049_v33 = vsel %vm1443_vm6, %v3041_v32, %v3043_v30  ;;  %v3048_v34 = vsel %vm1443_vm6, %v3039_v25, %v3041_v32 }
 0x4f8   :  { %3526 = vmatprep.subr.msk.bf16.mxu1 %vm1845_vm8, %v2369_v41  ;;  %v3061_v36 = vsel %vm1845_vm8, %v3048_v34, 0 }
 0x4f9   :  { %v3204_v37 = vpop.permute.xlu0 %3203 }
 0x4fd   :  { %v3208_v40 = vpop.permute.xlu0 %3207 }
 0x4fe   :  { %3525 = vmatmul.mubr.msk.bf16.vlgmr.msra.gmra.mrb[8].mxu1 %vm1898_vm2, %v3521_v38 }
 0x4ff   :  { %2479 = vmatpush1.bf16.msra.mxu1 %v2391_v44  ;;  %2510 = vmatprep.mubr.bf16.mxu1 %v3903_v0 }
 0x500   :  { %3529 = vmatprep.subr.msk.bf16.mxu1 %vm1845_vm8, %v2540_v46 }
 0x501   :  { %v3212_v45 = vpop.permute.xlu0 %3211 }
 0x506   :  { %3527 = vmatmul.mubr.msk.bf16.vlgmr.msra.gmra.mrb[12].mxu1 %vm1898_vm2, %v3521_v38  ;;  %v3045_v38 = vpop.permute.xlu1 %3044 }
 0x507   :  { %2566 = vmatpush1.bf16.msra.mxu1 %v2548_v49  ;;  %2597 = vmatprep.mubr.bf16.mxu1 %v3903_v0  ;;  %v3050_v39 = vsel %vm1443_vm6, %v3043_v30, %v3045_v38 }
 0x508   :  { %3531 = vmatprep.subr.msk.bf16.mxu1 %vm1845_vm8, %v2542_v51  ;;  %v3067_v41 = vsel %vm1845_vm8, %v3050_v39, 0 }
 0x50a   :  { %v3206_v42 = vpop.permute.xlu1 %3205 }
 0x50b   :  { %v3216_v43 = vsel %vm1601_vm7, %v3206_v42, %v3208_v40  ;;  %v3215_v44 = vsel %vm1601_vm7, %v3204_v37, %v3206_v42 }
 0x50c   :  { %v3224_v46 = vsel %vm1845_vm8, %v3215_v44, 0 }
 0x50e   :  { %3530 = vmatmul.mubr.msk.bf16.vlgmr.msra.gmra.mrb[4].mxu1 %vm1898_vm2, %v3528_v53  ;;  %v3210_v47 = vpop.permute.xlu1 %3209 }
 0x50f   :  { %2607 = vmatpush1.bf16.msra.mxu1 %v2554_v54  ;;  %2638 = vmatprep.mubr.bf16.mxu1 %v3903_v0  ;;  %v3218_v48 = vsel %vm1601_vm7, %v3210_v47, %v3212_v45  ;;  %v3217_v49 = vsel %vm1601_vm7, %v3208_v40, %v3210_v47 }
 0x510   :  { %3533 = vmatprep.subr.msk.bf16.mxu1 %vm1845_vm8, %v2538_v56  ;;  %v3230_v51 = vsel %vm1845_vm8, %v3217_v49, 0 }
 0x512   :  { %v3214_v52 = vpop.permute.xlu1 %3213  ;;  %v3374_v55 = vpop.permute.xlu0 %3373 }
 0x516   :  { %3532 = vmatmul.mubr.msk.bf16.vlgmr.msra.gmra.mrb[8].mxu1 %vm1898_vm2, %v3528_v53 }
 0x517   :  { %2648 = vmatpush1.bf16.msra.mxu1 %v2560_v59  ;;  %2679 = vmatprep.mubr.bf16.mxu1 %v3903_v0  ;;  %v3386_v59 = vpop.permute.xlu1 %3385 }
 0x518   :  { %3536 = vmatprep.subr.msk.bf16.mxu1 %vm1845_vm8, %v2709_v61 }
 0x51e   :  { %3534 = vmatmul.mubr.msk.bf16.vlgmr.msra.gmra.mrb[12].mxu1 %vm1898_vm2, %v3528_v53  ;;  %v3219_v53 = vsel %vm1601_vm7, %v3212_v45, %v3214_v52 }
 0x51f   :  { %2735 = vmatpush1.bf16.msra.mxu1 %v2717_v1  ;;  %2766 = vmatprep.mubr.bf16.mxu1 %v3903_v0  ;;  %v3236_v54 = vsel %vm1845_vm8, %v3219_v53, 0 }
 0x520   :  { %3538 = vmatprep.subr.msk.bf16.mxu1 %vm1845_vm8, %v2711_v3 }
 0x526   :  { %3537 = vmatmul.mubr.msk.bf16.vlgmr.msra.gmra.mrb[4].mxu1 %vm1898_vm2, %v3535_v5 }
 0x527   :  { %2776 = vmatpush1.bf16.msra.mxu1 %v2723_v6  ;;  %2807 = vmatprep.mubr.bf16.mxu1 %v3903_v0 }
 0x528   :  { %3540 = vmatprep.subr.msk.bf16.mxu1 %vm1845_vm8, %v2707_v8 }
 0x52e   :  { %3539 = vmatmul.mubr.msk.bf16.vlgmr.msra.gmra.mrb[8].mxu1 %vm1898_vm2, %v3535_v5 }
 0x52f   :  { %2817 = vmatpush1.bf16.msra.mxu1 %v2729_v11  ;;  %2848 = vmatprep.mubr.bf16.mxu1 %v3903_v0 }
 0x530   :  { %3543 = vmatprep.subr.msk.bf16.mxu1 %vm1845_vm8, %v2878_v13 }
 0x536   :  { %3541 = vmatmul.mubr.msk.bf16.vlgmr.msra.gmra.mrb[12].mxu1 %vm1898_vm2, %v3535_v5 }
 0x537   :  { %2904 = vmatpush1.bf16.msra.mxu1 %v2886_v16  ;;  %2935 = vmatprep.mubr.bf16.mxu1 %v3903_v0 }
 0x538   :  { %3545 = vmatprep.subr.msk.bf16.mxu1 %vm1845_vm8, %v2880_v18 }
 0x53e   :  { %3544 = vmatmul.mubr.msk.bf16.vlgmr.msra.gmra.mrb[4].mxu1 %vm1898_vm2, %v3542_v20 }
 0x53f   :  { %2945 = vmatpush1.bf16.msra.mxu1 %v2892_v21  ;;  %2976 = vmatprep.mubr.bf16.mxu1 %v3903_v0 }
 0x540   :  { %3547 = vmatprep.subr.msk.bf16.mxu1 %vm1845_vm8, %v2876_v23 }
 0x546   :  { %3546 = vmatmul.mubr.msk.bf16.vlgmr.msra.gmra.mrb[8].mxu1 %vm1898_vm2, %v3542_v20 }
 0x547   :  { %2986 = vmatpush1.bf16.msra.mxu1 %v2898_v26  ;;  %3017 = vmatprep.mubr.bf16.mxu1 %v3903_v0 }
 0x548   :  { %3550 = vmatprep.subr.msk.bf16.mxu1 %vm1845_vm8, %v3047_v28 }
 0x54e   :  { %3548 = vmatmul.mubr.msk.bf16.vlgmr.msra.gmra.mrb[12].mxu1 %vm1898_vm2, %v3542_v20 }
 0x54f   :  { %3073 = vmatpush1.bf16.msra.mxu1 %v3055_v31  ;;  %3104 = vmatprep.mubr.bf16.mxu1 %v3903_v0 }
 0x550   :  { %3552 = vmatprep.subr.msk.bf16.mxu1 %vm1845_vm8, %v3049_v33 }
 0x556   :  { %3551 = vmatmul.mubr.msk.bf16.vlgmr.msra.gmra.mrb[4].mxu1 %vm1898_vm2, %v3549_v35 }
 0x557   :  { %3114 = vmatpush1.bf16.msra.mxu1 %v3061_v36  ;;  %3145 = vmatprep.mubr.bf16.mxu1 %v3903_v0 }
 0x558   :  { %3554 = vmatprep.subr.msk.bf16.mxu1 %vm1845_vm8, %v3045_v38 }
 0x55e   :  { %3553 = vmatmul.mubr.msk.bf16.vlgmr.msra.gmra.mrb[8].mxu1 %vm1898_vm2, %v3549_v35 }
 0x55f   :  { %3155 = vmatpush1.bf16.msra.mxu1 %v3067_v41  ;;  %3186 = vmatprep.mubr.bf16.mxu1 %v3903_v0 }
 0x560   :  { %3557 = vmatprep.subr.msk.bf16.mxu1 %vm1845_vm8, %v3216_v43 }
 0x566   :  { %3555 = vmatmul.mubr.msk.bf16.vlgmr.msra.gmra.mrb[12].mxu1 %vm1898_vm2, %v3549_v35 }
 0x567   :  { %3242 = vmatpush1.bf16.msra.mxu1 %v3224_v46  ;;  %3273 = vmatprep.mubr.bf16.mxu1 %v3903_v0 }
 0x568   :  { %3559 = vmatprep.subr.msk.bf16.mxu1 %vm1845_vm8, %v3218_v48 }
 0x56e   :  { %3558 = vmatmul.mubr.msk.bf16.vlgmr.msra.gmra.mrb[4].mxu1 %vm1898_vm2, %v3556_v50 }
 0x56f   :  { %3283 = vmatpush1.bf16.msra.mxu1 %v3230_v51  ;;  %3314 = vmatprep.mubr.bf16.mxu1 %v3903_v0 }
 0x570   :  { %3561 = vmatprep.subr.msk.bf16.mxu1 %vm1845_vm8, %v3214_v52 }
 0x576   :  { %3560 = vmatmul.mubr.msk.bf16.vlgmr.msra.gmra.mrb[8].mxu1 %vm1898_vm2, %v3556_v50 }
 0x577   :  { %3324 = vmatpush1.bf16.msra.mxu1 %v3236_v54  ;;  %3355 = vmatprep.mubr.bf16.mxu1 %v3903_v0 }
 0x57e   :  { %3562 = vmatmul.mubr.msk.bf16.vlgmr.msra.gmra.mrb[12].mxu1 %vm1898_vm2, %v3556_v50 }
 0x641   :  { %v3275_v56 = vpop.f32.mrb[4].mxu1 }
 0x642   :  { %v3376_v57 = vmul.f32 %v3374_v55, %v3275_v56  ;;  %v3277_v58 = vpop.f32.mrb[5].mxu1 }
 0x643   :  { %v3377_v60 = vmul.f32 %v3374_v55, %v3277_v58  ;;  %v3279_v61 = vpop.f32.mrb[6].mxu1 }
 0x644   :  { %v3388_v62 = vadd.f32 %v3386_v59, %v3376_v57  ;;  %v3280_v63 = vpop.f32.mrb[7].mxu1 }
 0x645   :  { %v3389_v1 = vadd.f32 %v3386_v59, %v3377_v60 }
 0x646   :  { %v3394_v2 = vmax.f32 %v3388_v62, 0.0 }
 0x647   :  { %v3395_v3 = vmax.f32 %v3389_v1, 0.0 }
 0x648   :  { %3400 = vst [vmem:[#allocation9] sm:$0xff] %v3394_v2 }
 0x649   :  { %3401 = vst [vmem:[#allocation9 + $0x8] sm:$0xff] %v3395_v3  ;;  %v3316_v4 = vpop.f32.mrb[8].mxu1 }
 0x64a   :  { %v3378_v5 = vmul.f32 %v3374_v55, %v3316_v4  ;;  %v3318_v6 = vpop.f32.mrb[9].mxu1 }
 0x64b   :  { %v3379_v0 = vmul.f32 %v3374_v55, %v3318_v6  ;;  %v3320_v7 = vpop.f32.mrb[10].mxu1 }
 0x64c   :  { %v3390_v8 = vadd.f32 %v3386_v59, %v3378_v5  ;;  %v3321_v9 = vpop.f32.mrb[11].mxu1 }
 0x64d   :  { %v3391_v10 = vadd.f32 %v3386_v59, %v3379_v0 }
 0x64e   :  { %v3396_v11 = vmax.f32 %v3390_v8, 0.0 }
 0x64f   :  { %v3397_v12 = vmax.f32 %v3391_v10, 0.0 }
 0x650   :  { %3408 = vrot.lane.b32.xlu0 %v3396_v11, %s3916_s6  ;;  %3403 = vst.msk [vmem:[#allocation9 + $0x10] sm:$0xff] %vm3402_vm4, %v3396_v11 }
 0x651   :  { %v3357_v13 = vpop.f32.mrb[12].mxu1  ;;  %3410 = vrot.lane.b32.xlu1 %v3397_v12, %s3916_s6 }
 0x652   :  { %v3380_v14 = vmul.f32 %v3374_v55, %v3357_v13  ;;  %v3359_v15 = vpop.f32.mrb[13].mxu1 }
 0x653   :  { %v3381_v16 = vmul.f32 %v3374_v55, %v3359_v15  ;;  %v3361_v17 = vpop.f32.mrb[14].mxu1 }
 0x654   :  { %v3392_v18 = vadd.f32 %v3386_v59, %v3380_v14  ;;  %v3362_v19 = vpop.f32.mrb[15].mxu1 }
 0x655   :  { %v3393_v20 = vadd.f32 %v3386_v59, %v3381_v16 }
 0x656   :  { %v3398_v21 = vmax.f32 %v3392_v18, 0.0 }
 0x657   :  { %v3399_v22 = vmax.f32 %v3393_v20, 0.0 }
 0x658   :  { %3412 = vrot.lane.b32.xlu0 %v3398_v21, %s3916_s6 }
 0x659   :  { %3414 = vrot.lane.b32.xlu1 %v3399_v22, %s3916_s6 }
 0x6c2   :  { %v3409_v23 = vpop.permute.xlu0 %3408 }
 0x6c3   :  { %v3411_v24 = vpop.permute.xlu1 %3410 }
 0x6c4   :  { %v3417_v25 = vsel %vm3416_vm12, %v3409_v23, %v3411_v24 }
 0x6c5   :  { %3423 = vst [vmem:[#allocation9 + $0x18] sm:$0xff] %v3417_v25 }
 0x6ca   :  { %v3413_v26 = vpop.permute.xlu0 %3412 }
 0x6cb   :  { %v3418_v27 = vsel %vm3416_vm12, %v3411_v24, %v3413_v26  ;;  %v3415_v28 = vpop.permute.xlu1 %3414 }
 0x6cc   :  { %3424 = vst [vmem:[#allocation9 + $0x20] sm:$0xff] %v3418_v27  ;;  %v3419_v29 = vsel %vm3416_vm12, %v3413_v26, %v3415_v28 }
 0x6cd   :  { %3425 = vst.msk [vmem:[#allocation9 + $0x28] sm:$0xff] %vm3402_vm4, %v3419_v29 }
 0x6ce   :  { %3880 = shalt.err (!%p3877_p6)
}
 0x6cf   :  { %s3881_s4 = scalar_lea.hbm %s4742_s10, 768 }
 0x6d0   :  { %p3882_p7 = scmp.ne.s32.totalorder %s4742_s10, %s3881_s4  ;;  %p3885_p8 = scmp.lt.u32.totalorder %s3881_s4, %s4742_s10 }
 0x6d2   :  { %p3887_p9 = pnand %p3885_p8, %p3882_p7 }
 0x6d4   :  { %3890 = shalt.err (!%p3887_p9)
}
 0x6d5   :  { %s3918_s1 = smov 384   ;;  %s3919_s8 = smov 24  }
 0x6d6   :  { %3437 = dma.vmem_to_hbm [thread:$0]  %s3432_s11, 768, %s4742_s10, [#allocation6], %s3918_s1, %s3918_s1, %s3919_s8  }
 0x6d7   :  { %3895 = dma.done.wait [#allocation6], 768  }
 0x6d8   :  { %3896 = vsyncadd [#allocation6], 4294966528 }
 0x6d9   :  { %3441 = vsyncpa [#allocation5], 1 }
 0x6da   :  { %3442 = vsyncpa [#allocation8], 1 }
 0x6db   :  { %3443 = vsyncpa [#allocation6], 1 }

</bundles_post_ra>
